<compile_context>
chip_gen: v7x
topology: tpu7x:2x2x1
jax: 0.10.0
libtpu: 0.0.40
codegen_flags: <defaults>
</compile_context>

<pallas_src>
import functools

import jax
import jax.numpy as jnp
from jax.experimental import pallas as pl
from jax.experimental.pallas import tpu as pltpu


def _ppeg_kernel(x_ref, w_ref, b_ref, o_ref, xpad_ref, *, H, W, K):
    """One (batch, channel-block): fused depthwise 7x7 (+5x5 +3x3 folded) + residual."""
    P = K // 2
    Wp = W + 2 * P
    CB = x_ref.shape[-1]
    cdt = xpad_ref.dtype

    x = x_ref[0]                                     # (H, W, CB), native dtype

    # Build the zero halo in VMEM (no padded copy in HBM): zero only the border
    # rows/cols, then copy the interior once.  Re-done every grid step so it is
    # safe under megacore grid splitting.
    xpad_ref[pl.ds(0, P), :, :] = jnp.zeros((P, Wp, CB), cdt)
    xpad_ref[pl.ds(P + H, P), :, :] = jnp.zeros((P, Wp, CB), cdt)
    xpad_ref[pl.ds(P, H), pl.ds(0, P), :] = jnp.zeros((H, P, CB), cdt)
    xpad_ref[pl.ds(P, H), pl.ds(P + W, P), :] = jnp.zeros((H, P, CB), cdt)
    xpad_ref[pl.ds(P, H), pl.ds(P, W), :] = x.astype(cdt)

    w = w_ref[...]                                   # (K*K, CB) f32, loaded once
    b = b_ref[0]                                     # (CB,) f32, combined bias

    # Identity residual fused into the centre tap; combined bias of the 3 convs.
    acc0 = x.astype(jnp.float32) * (1.0 + w[P * K + P]) + b
    acc1 = None                                      # second chain -> keeps VALU slots fed

    t = 0
    for dx in range(K):
        # One unaligned sublane-window extraction per dx (7 total, not 48).
        slab = xpad_ref[:, pl.ds(dx, W), :]          # (Hp, W, CB)
        for dy in range(K):
            if dy == P and dx == P:
                continue                             # centre tap already in acc0
            tap = slab[dy:dy + H]                    # leading-axis slice: vreg selection
            contrib = w[dy * K + dx] * tap.astype(jnp.float32)
            if t % 2 == 0:
                acc0 = acc0 + contrib
            else:
                acc1 = contrib if acc1 is None else acc1 + contrib
            t += 1

    o_ref[0] = (acc0 + acc1).astype(o_ref.dtype)


def ppeg_pallas(x, w7, b7, w5, b5, w3, b3, H, W):
    """x: (B, N, C) with N == H*W. wK: (C, 1, K, K) torch-layout depthwise weights."""
    B, N, C = x.shape
    assert N == H * W, "PPEG requires N == H * W"
    K = 7
    P = K // 2
    Hp, Wp = H + 2 * P, W + 2 * P

    # Fold the three centred depthwise convs into one 7x7 kernel + one bias.
    def to_hwc(w):  # (C, 1, k, k) -> (k, k, C)
        return jnp.transpose(w[:, 0], (1, 2, 0))

    wc = (to_hwc(w7)
          + jnp.pad(to_hwc(w5), ((1, 1), (1, 1), (0, 0)))
          + jnp.pad(to_hwc(w3), ((2, 2), (2, 2), (0, 0))))
    wc = wc.reshape(K * K, C).astype(jnp.float32)
    bc = (b7 + b5 + b3).reshape(1, C).astype(jnp.float32)

    # Channel-block tiling: lane-dense 128-channel blocks when possible.
    CB = 128 if (C % 128 == 0) else C
    n_cblk = C // CB

    # (B,N,C) -> (B,H,W,C): free reshape, channels stay on lanes, NO padding copy,
    # NO dtype upcast (keeps HBM traffic in the caller's dtype).
    xs = x.reshape(B, H, W, C)

    # Rough VMEM budget: double-buffered in/out blocks + halo scratch + weights.
    itemsize = xs.dtype.itemsize
    blk_bytes = H * W * CB * itemsize
    pad_bytes = Hp * Wp * CB * itemsize
    w_bytes = (K * K + 1) * CB * 4
    need = 4 * blk_bytes + pad_bytes + 2 * w_bytes + (4 << 20)
    vmem_limit = int(min(max(need, 32 << 20), 64 << 20))

    kernel = functools.partial(_ppeg_kernel, H=H, W=W, K=K)
    out = pl.pallas_call(
        kernel,
        out_shape=jax.ShapeDtypeStruct((B, H, W, C), xs.dtype),
        grid=(B, n_cblk),
        in_specs=[
            pl.BlockSpec((1, H, W, CB), lambda b, c: (b, 0, 0, c)),
            pl.BlockSpec((K * K, CB), lambda b, c: (0, c)),
            pl.BlockSpec((1, CB), lambda b, c: (0, c)),
        ],
        out_specs=pl.BlockSpec((1, H, W, CB), lambda b, c: (b, 0, 0, c)),
        scratch_shapes=[pltpu.VMEM((Hp, Wp, CB), xs.dtype)],
        compiler_params=pltpu.CompilerParams(
            dimension_semantics=("parallel", "parallel"),
            vmem_limit_bytes=vmem_limit),
    )(xs, wc, bc)

    return out.reshape(B, N, C)


def ppeg_reference(x, w7, b7, w5, b5, w3, b3, H, W):
    """Pure-JAX reference matching the PyTorch module exactly."""
    B, N, C = x.shape
    feat = jnp.transpose(x, (0, 2, 1)).reshape(B, C, H, W)

    def dwconv(w, b, k):
        y = jax.lax.conv_general_dilated(
            feat, w, window_strides=(1, 1),
            padding=[(k // 2, k // 2), (k // 2, k // 2)],
            dimension_numbers=("NCHW", "OIHW", "NCHW"),
            feature_group_count=C,
            precision=jax.lax.Precision.HIGHEST)
        return y + b.reshape(1, C, 1, 1)

    y = dwconv(w7, b7, 7) + feat + dwconv(w5, b5, 5) + dwconv(w3, b3, 3)
    return jnp.transpose(y.reshape(B, C, N), (0, 2, 1))


if __name__ == "__main__":
    # Small shapes consistent with PPEG (default dim=512; use 128 = one lane tile).
    B, C, H, W = 2, 128, 8, 8
    N = H * W

    key = jax.random.PRNGKey(0)
    ks = jax.random.split(key, 7)
    x = jax.random.normal(ks[0], (B, N, C), dtype=jnp.float32)
    w7 = (jax.random.normal(ks[1], (C, 1, 7, 7)) * 0.1).astype(jnp.float32)
    b7 = (jax.random.normal(ks[2], (C,)) * 0.1).astype(jnp.float32)
    w5 = (jax.random.normal(ks[3], (C, 1, 5, 5)) * 0.1).astype(jnp.float32)
    b5 = (jax.random.normal(ks[4], (C,)) * 0.1).astype(jnp.float32)
    w3 = (jax.random.normal(ks[5], (C, 1, 3, 3)) * 0.1).astype(jnp.float32)
    b3 = (jax.random.normal(ks[6], (C,)) * 0.1).astype(jnp.float32)

    out = ppeg_pallas(x, w7, b7, w5, b5, w3, b3, H, W)
    out = jax.block_until_ready(out)
    assert out.shape == (B, N, C), out.shape
    assert bool(jnp.all(jnp.isfinite(out)))

    ref = ppeg_reference(x, w7, b7, w5, b5, w3, b3, H, W)
    max_err = float(jnp.max(jnp.abs(out - ref)))
    assert bool(jnp.allclose(out, ref, atol=1e-4, rtol=1e-4)), max_err

    print("KERNEL_OK")
</pallas_src>

<mosaic_0001>
module attributes {stable_mosaic.version = 11 : i64} {
  func.func @_ppeg_kernel(%arg0: i32, %arg1: i32, %arg2: memref<1x8x8x128xf32, #tpu.memory_space<vmem>>, %arg3: memref<49x128xf32, #tpu.memory_space<vmem>>, %arg4: memref<1x128xf32, #tpu.memory_space<vmem>>, %arg5: memref<1x8x8x128xf32, #tpu.memory_space<vmem>>, %arg6: memref<14x14x128xf32, #tpu.memory_space<vmem>>) attributes {dimension_semantics = [#tpu.dimension_semantics<parallel>, #tpu.dimension_semantics<parallel>], iteration_bounds = array<i64: 2, 1>, scalar_prefetch = 0 : i64, scratch_operands = 1 : i64, tpu.core_type = #tpu.core_type<tc>, window_params = [{transform_indices = @transform_0, window_bounds = array<i64: 1, 8, 8, 128>}, {transform_indices = @transform_1, window_bounds = array<i64: 49, 128>}, {transform_indices = @transform_2, window_bounds = array<i64: 1, 128>}, {transform_indices = @transform_3, window_bounds = array<i64: 1, 8, 8, 128>}]} {
    %c0 = arith.constant 0 : index
    %c0_0 = arith.constant 0 : index
    %c0_1 = arith.constant 0 : index
    %c0_2 = arith.constant 0 : index
    %0 = vector.load %arg2[%c0, %c0_0, %c0_1, %c0_2] : memref<1x8x8x128xf32, #tpu.memory_space<vmem>>, vector<1x8x8x128xf32>
    %1 = vector.shape_cast %0 : vector<1x8x8x128xf32> to vector<8x8x128xf32>
    %cst = arith.constant 0.000000e+00 : f32
    %2 = vector.broadcast %cst : f32 to vector<3x14x128xf32>
    %c0_3 = arith.constant 0 : index
    %c0_4 = arith.constant 0 : index
    %c0_5 = arith.constant 0 : index
    %3 = vector.load %arg6[%c0_3, %c0_4, %c0_5] : memref<14x14x128xf32, #tpu.memory_space<vmem>>, vector<3x14x128xf32>
    tpu.vector_store %arg6[%c0_3, %c0_4, %c0_5], %2 {strides = array<i32>} : memref<14x14x128xf32, #tpu.memory_space<vmem>>, vector<3x14x128xf32>,
    %cst_6 = arith.constant 0.000000e+00 : f32
    %4 = vector.broadcast %cst_6 : f32 to vector<3x14x128xf32>
    %c11 = arith.constant 11 : index
    %c0_7 = arith.constant 0 : index
    %c0_8 = arith.constant 0 : index
    %5 = vector.load %arg6[%c11, %c0_7, %c0_8] : memref<14x14x128xf32, #tpu.memory_space<vmem>>, vector<3x14x128xf32>
    tpu.vector_store %arg6[%c11, %c0_7, %c0_8], %4 {strides = array<i32>} : memref<14x14x128xf32, #tpu.memory_space<vmem>>, vector<3x14x128xf32>,
    %cst_9 = arith.constant 0.000000e+00 : f32
    %6 = vector.broadcast %cst_9 : f32 to vector<8x3x128xf32>
    %c3 = arith.constant 3 : index
    %c0_10 = arith.constant 0 : index
    %c0_11 = arith.constant 0 : index
    %7 = vector.load %arg6[%c3, %c0_10, %c0_11] : memref<14x14x128xf32, #tpu.memory_space<vmem>>, vector<8x3x128xf32>
    tpu.vector_store %arg6[%c3, %c0_10, %c0_11], %6 {strides = array<i32>} : memref<14x14x128xf32, #tpu.memory_space<vmem>>, vector<8x3x128xf32>,
    %cst_12 = arith.constant 0.000000e+00 : f32
    %8 = vector.broadcast %cst_12 : f32 to vector<8x3x128xf32>
    %c3_13 = arith.constant 3 : index
    %c11_14 = arith.constant 11 : index
    %c0_15 = arith.constant 0 : index
    %9 = vector.load %arg6[%c3_13, %c11_14, %c0_15] : memref<14x14x128xf32, #tpu.memory_space<vmem>>, vector<8x3x128xf32>
    tpu.vector_store %arg6[%c3_13, %c11_14, %c0_15], %8 {strides = array<i32>} : memref<14x14x128xf32, #tpu.memory_space<vmem>>, vector<8x3x128xf32>,
    %c3_16 = arith.constant 3 : index
    %c3_17 = arith.constant 3 : index
    %c0_18 = arith.constant 0 : index
    %10 = vector.load %arg6[%c3_16, %c3_17, %c0_18] : memref<14x14x128xf32, #tpu.memory_space<vmem>>, vector<8x8x128xf32>
    tpu.vector_store %arg6[%c3_16, %c3_17, %c0_18], %1 {strides = array<i32>} : memref<14x14x128xf32, #tpu.memory_space<vmem>>, vector<8x8x128xf32>,
    %c0_19 = arith.constant 0 : index
    %c0_20 = arith.constant 0 : index
    %11 = vector.load %arg3[%c0_19, %c0_20] : memref<49x128xf32, #tpu.memory_space<vmem>>, vector<49x128xf32>
    %c0_21 = arith.constant 0 : index
    %c0_22 = arith.constant 0 : index
    %12 = vector.load %arg4[%c0_21, %c0_22] : memref<1x128xf32, #tpu.memory_space<vmem>>, vector<1x128xf32>
    %13 = vector.shape_cast %12 : vector<1x128xf32> to vector<128xf32>
    %14 = vector.extract_strided_slice %11 {offsets = [24, 0], sizes = [1, 128], strides = [1, 1]} : vector<49x128xf32> to vector<1x128xf32>
    %15 = vector.shape_cast %14 : vector<1x128xf32> to vector<128xf32>
    %cst_23 = arith.constant 1.000000e+00 : f32
    %16 = vector.broadcast %cst_23 : f32 to vector<128xf32>
    %17 = arith.addf %16, %15 : vector<128xf32>
    %18 = vector.shape_cast %17 : vector<128xf32> to vector<1x1x128xf32>
    %19 = vector.broadcast %18 : vector<1x1x128xf32> to vector<8x8x128xf32>
    %20 = arith.mulf %1, %19 : vector<8x8x128xf32>
    %21 = vector.shape_cast %13 : vector<128xf32> to vector<1x1x128xf32>
    %22 = vector.broadcast %21 : vector<1x1x128xf32> to vector<8x8x128xf32>
    %23 = arith.addf %20, %22 : vector<8x8x128xf32>
    %c0_24 = arith.constant 0 : index
    %c0_25 = arith.constant 0 : index
    %c0_26 = arith.constant 0 : index
    %24 = vector.load %arg6[%c0_24, %c0_25, %c0_26] : memref<14x14x128xf32, #tpu.memory_space<vmem>>, vector<14x8x128xf32>
    %25 = vector.extract_strided_slice %24 {offsets = [0, 0, 0], sizes = [8, 8, 128], strides = [1, 1, 1]} : vector<14x8x128xf32> to vector<8x8x128xf32>
    %26 = vector.extract_strided_slice %11 {offsets = [0, 0], sizes = [1, 128], strides = [1, 1]} : vector<49x128xf32> to vector<1x128xf32>
    %27 = vector.shape_cast %26 : vector<1x128xf32> to vector<128xf32>
    %28 = vector.shape_cast %27 : vector<128xf32> to vector<1x1x128xf32>
    %29 = vector.broadcast %28 : vector<1x1x128xf32> to vector<8x8x128xf32>
    %30 = arith.mulf %29, %25 : vector<8x8x128xf32>
    %31 = arith.addf %23, %30 : vector<8x8x128xf32>
    %32 = vector.extract_strided_slice %24 {offsets = [1, 0, 0], sizes = [8, 8, 128], strides = [1, 1, 1]} : vector<14x8x128xf32> to vector<8x8x128xf32>
    %33 = vector.extract_strided_slice %11 {offsets = [7, 0], sizes = [1, 128], strides = [1, 1]} : vector<49x128xf32> to vector<1x128xf32>
    %34 = vector.shape_cast %33 : vector<1x128xf32> to vector<128xf32>
    %35 = vector.shape_cast %34 : vector<128xf32> to vector<1x1x128xf32>
    %36 = vector.broadcast %35 : vector<1x1x128xf32> to vector<8x8x128xf32>
    %37 = arith.mulf %36, %32 : vector<8x8x128xf32>
    %38 = vector.extract_strided_slice %24 {offsets = [2, 0, 0], sizes = [8, 8, 128], strides = [1, 1, 1]} : vector<14x8x128xf32> to vector<8x8x128xf32>
    %39 = vector.extract_strided_slice %11 {offsets = [14, 0], sizes = [1, 128], strides = [1, 1]} : vector<49x128xf32> to vector<1x128xf32>
    %40 = vector.shape_cast %39 : vector<1x128xf32> to vector<128xf32>
    %41 = vector.shape_cast %40 : vector<128xf32> to vector<1x1x128xf32>
    %42 = vector.broadcast %41 : vector<1x1x128xf32> to vector<8x8x128xf32>
    %43 = arith.mulf %42, %38 : vector<8x8x128xf32>
    %44 = arith.addf %31, %43 : vector<8x8x128xf32>
    %45 = vector.extract_strided_slice %24 {offsets = [3, 0, 0], sizes = [8, 8, 128], strides = [1, 1, 1]} : vector<14x8x128xf32> to vector<8x8x128xf32>
    %46 = vector.extract_strided_slice %11 {offsets = [21, 0], sizes = [1, 128], strides = [1, 1]} : vector<49x128xf32> to vector<1x128xf32>
    %47 = vector.shape_cast %46 : vector<1x128xf32> to vector<128xf32>
    %48 = vector.shape_cast %47 : vector<128xf32> to vector<1x1x128xf32>
    %49 = vector.broadcast %48 : vector<1x1x128xf32> to vector<8x8x128xf32>
    %50 = arith.mulf %49, %45 : vector<8x8x128xf32>
    %51 = arith.addf %37, %50 : vector<8x8x128xf32>
    %52 = vector.extract_strided_slice %24 {offsets = [4, 0, 0], sizes = [8, 8, 128], strides = [1, 1, 1]} : vector<14x8x128xf32> to vector<8x8x128xf32>
    %53 = vector.extract_strided_slice %11 {offsets = [28, 0], sizes = [1, 128], strides = [1, 1]} : vector<49x128xf32> to vector<1x128xf32>
    %54 = vector.shape_cast %53 : vector<1x128xf32> to vector<128xf32>
    %55 = vector.shape_cast %54 : vector<128xf32> to vector<1x1x128xf32>
    %56 = vector.broadcast %55 : vector<1x1x128xf32> to vector<8x8x128xf32>
    %57 = arith.mulf %56, %52 : vector<8x8x128xf32>
    %58 = arith.addf %44, %57 : vector<8x8x128xf32>
    %59 = vector.extract_strided_slice %24 {offsets = [5, 0, 0], sizes = [8, 8, 128], strides = [1, 1, 1]} : vector<14x8x128xf32> to vector<8x8x128xf32>
    %60 = vector.extract_strided_slice %11 {offsets = [35, 0], sizes = [1, 128], strides = [1, 1]} : vector<49x128xf32> to vector<1x128xf32>
    %61 = vector.shape_cast %60 : vector<1x128xf32> to vector<128xf32>
    %62 = vector.shape_cast %61 : vector<128xf32> to vector<1x1x128xf32>
    %63 = vector.broadcast %62 : vector<1x1x128xf32> to vector<8x8x128xf32>
    %64 = arith.mulf %63, %59 : vector<8x8x128xf32>
    %65 = arith.addf %51, %64 : vector<8x8x128xf32>
    %66 = vector.extract_strided_slice %24 {offsets = [6, 0, 0], sizes = [8, 8, 128], strides = [1, 1, 1]} : vector<14x8x128xf32> to vector<8x8x128xf32>
    %67 = vector.extract_strided_slice %11 {offsets = [42, 0], sizes = [1, 128], strides = [1, 1]} : vector<49x128xf32> to vector<1x128xf32>
    %68 = vector.shape_cast %67 : vector<1x128xf32> to vector<128xf32>
    %69 = vector.shape_cast %68 : vector<128xf32> to vector<1x1x128xf32>
    %70 = vector.broadcast %69 : vector<1x1x128xf32> to vector<8x8x128xf32>
    %71 = arith.mulf %70, %66 : vector<8x8x128xf32>
    %72 = arith.addf %58, %71 : vector<8x8x128xf32>
    %c0_27 = arith.constant 0 : index
    %c1 = arith.constant 1 : index
    %c0_28 = arith.constant 0 : index
    %73 = vector.load %arg6[%c0_27, %c1, %c0_28] : memref<14x14x128xf32, #tpu.memory_space<vmem>>, vector<14x8x128xf32>
    %74 = vector.extract_strided_slice %73 {offsets = [0, 0, 0], sizes = [8, 8, 128], strides = [1, 1, 1]} : vector<14x8x128xf32> to vector<8x8x128xf32>
    %75 = vector.extract_strided_slice %11 {offsets = [1, 0], sizes = [1, 128], strides = [1, 1]} : vector<49x128xf32> to vector<1x128xf32>
    %76 = vector.shape_cast %75 : vector<1x128xf32> to vector<128xf32>
    %77 = vector.shape_cast %76 : vector<128xf32> to vector<1x1x128xf32>
    %78 = vector.broadcast %77 : vector<1x1x128xf32> to vector<8x8x128xf32>
    %79 = arith.mulf %78, %74 : vector<8x8x128xf32>
    %80 = arith.addf %65, %79 : vector<8x8x128xf32>
    %81 = vector.extract_strided_slice %73 {offsets = [1, 0, 0], sizes = [8, 8, 128], strides = [1, 1, 1]} : vector<14x8x128xf32> to vector<8x8x128xf32>
    %82 = vector.extract_strided_slice %11 {offsets = [8, 0], sizes = [1, 128], strides = [1, 1]} : vector<49x128xf32> to vector<1x128xf32>
    %83 = vector.shape_cast %82 : vector<1x128xf32> to vector<128xf32>
    %84 = vector.shape_cast %83 : vector<128xf32> to vector<1x1x128xf32>
    %85 = vector.broadcast %84 : vector<1x1x128xf32> to vector<8x8x128xf32>
    %86 = arith.mulf %85, %81 : vector<8x8x128xf32>
    %87 = arith.addf %72, %86 : vector<8x8x128xf32>
    %88 = vector.extract_strided_slice %73 {offsets = [2, 0, 0], sizes = [8, 8, 128], strides = [1, 1, 1]} : vector<14x8x128xf32> to vector<8x8x128xf32>
    %89 = vector.extract_strided_slice %11 {offsets = [15, 0], sizes = [1, 128], strides = [1, 1]} : vector<49x128xf32> to vector<1x128xf32>
    %90 = vector.shape_cast %89 : vector<1x128xf32> to vector<128xf32>
    %91 = vector.shape_cast %90 : vector<128xf32> to vector<1x1x128xf32>
    %92 = vector.broadcast %91 : vector<1x1x128xf32> to vector<8x8x128xf32>
    %93 = arith.mulf %92, %88 : vector<8x8x128xf32>
    %94 = arith.addf %80, %93 : vector<8x8x128xf32>
    %95 = vector.extract_strided_slice %73 {offsets = [3, 0, 0], sizes = [8, 8, 128], strides = [1, 1, 1]} : vector<14x8x128xf32> to vector<8x8x128xf32>
    %96 = vector.extract_strided_slice %11 {offsets = [22, 0], sizes = [1, 128], strides = [1, 1]} : vector<49x128xf32> to vector<1x128xf32>
    %97 = vector.shape_cast %96 : vector<1x128xf32> to vector<128xf32>
    %98 = vector.shape_cast %97 : vector<128xf32> to vector<1x1x128xf32>
    %99 = vector.broadcast %98 : vector<1x1x128xf32> to vector<8x8x128xf32>
    %100 = arith.mulf %99, %95 : vector<8x8x128xf32>
    %101 = arith.addf %87, %100 : vector<8x8x128xf32>
    %102 = vector.extract_strided_slice %73 {offsets = [4, 0, 0], sizes = [8, 8, 128], strides = [1, 1, 1]} : vector<14x8x128xf32> to vector<8x8x128xf32>
    %103 = vector.extract_strided_slice %11 {offsets = [29, 0], sizes = [1, 128], strides = [1, 1]} : vector<49x128xf32> to vector<1x128xf32>
    %104 = vector.shape_cast %103 : vector<1x128xf32> to vector<128xf32>
    %105 = vector.shape_cast %104 : vector<128xf32> to vector<1x1x128xf32>
    %106 = vector.broadcast %105 : vector<1x1x128xf32> to vector<8x8x128xf32>
    %107 = arith.mulf %106, %102 : vector<8x8x128xf32>
    %108 = arith.addf %94, %107 : vector<8x8x128xf32>
    %109 = vector.extract_strided_slice %73 {offsets = [5, 0, 0], sizes = [8, 8, 128], strides = [1, 1, 1]} : vector<14x8x128xf32> to vector<8x8x128xf32>
    %110 = vector.extract_strided_slice %11 {offsets = [36, 0], sizes = [1, 128], strides = [1, 1]} : vector<49x128xf32> to vector<1x128xf32>
    %111 = vector.shape_cast %110 : vector<1x128xf32> to vector<128xf32>
    %112 = vector.shape_cast %111 : vector<128xf32> to vector<1x1x128xf32>
    %113 = vector.broadcast %112 : vector<1x1x128xf32> to vector<8x8x128xf32>
    %114 = arith.mulf %113, %109 : vector<8x8x128xf32>
    %115 = arith.addf %101, %114 : vector<8x8x128xf32>
    %116 = vector.extract_strided_slice %73 {offsets = [6, 0, 0], sizes = [8, 8, 128], strides = [1, 1, 1]} : vector<14x8x128xf32> to vector<8x8x128xf32>
    %117 = vector.extract_strided_slice %11 {offsets = [43, 0], sizes = [1, 128], strides = [1, 1]} : vector<49x128xf32> to vector<1x128xf32>
    %118 = vector.shape_cast %117 : vector<1x128xf32> to vector<128xf32>
    %119 = vector.shape_cast %118 : vector<128xf32> to vector<1x1x128xf32>
    %120 = vector.broadcast %119 : vector<1x1x128xf32> to vector<8x8x128xf32>
    %121 = arith.mulf %120, %116 : vector<8x8x128xf32>
    %122 = arith.addf %108, %121 : vector<8x8x128xf32>
    %c0_29 = arith.constant 0 : index
    %c2 = arith.constant 2 : index
    %c0_30 = arith.constant 0 : index
    %123 = vector.load %arg6[%c0_29, %c2, %c0_30] : memref<14x14x128xf32, #tpu.memory_space<vmem>>, vector<14x8x128xf32>
    %124 = vector.extract_strided_slice %123 {offsets = [0, 0, 0], sizes = [8, 8, 128], strides = [1, 1, 1]} : vector<14x8x128xf32> to vector<8x8x128xf32>
    %125 = vector.extract_strided_slice %11 {offsets = [2, 0], sizes = [1, 128], strides = [1, 1]} : vector<49x128xf32> to vector<1x128xf32>
    %126 = vector.shape_cast %125 : vector<1x128xf32> to vector<128xf32>
    %127 = vector.shape_cast %126 : vector<128xf32> to vector<1x1x128xf32>
    %128 = vector.broadcast %127 : vector<1x1x128xf32> to vector<8x8x128xf32>
    %129 = arith.mulf %128, %124 : vector<8x8x128xf32>
    %130 = arith.addf %115, %129 : vector<8x8x128xf32>
    %131 = vector.extract_strided_slice %123 {offsets = [1, 0, 0], sizes = [8, 8, 128], strides = [1, 1, 1]} : vector<14x8x128xf32> to vector<8x8x128xf32>
    %132 = vector.extract_strided_slice %11 {offsets = [9, 0], sizes = [1, 128], strides = [1, 1]} : vector<49x128xf32> to vector<1x128xf32>
    %133 = vector.shape_cast %132 : vector<1x128xf32> to vector<128xf32>
    %134 = vector.shape_cast %133 : vector<128xf32> to vector<1x1x128xf32>
    %135 = vector.broadcast %134 : vector<1x1x128xf32> to vector<8x8x128xf32>
    %136 = arith.mulf %135, %131 : vector<8x8x128xf32>
    %137 = arith.addf %122, %136 : vector<8x8x128xf32>
    %138 = vector.extract_strided_slice %123 {offsets = [2, 0, 0], sizes = [8, 8, 128], strides = [1, 1, 1]} : vector<14x8x128xf32> to vector<8x8x128xf32>
    %139 = vector.extract_strided_slice %11 {offsets = [16, 0], sizes = [1, 128], strides = [1, 1]} : vector<49x128xf32> to vector<1x128xf32>
    %140 = vector.shape_cast %139 : vector<1x128xf32> to vector<128xf32>
    %141 = vector.shape_cast %140 : vector<128xf32> to vector<1x1x128xf32>
    %142 = vector.broadcast %141 : vector<1x1x128xf32> to vector<8x8x128xf32>
    %143 = arith.mulf %142, %138 : vector<8x8x128xf32>
    %144 = arith.addf %130, %143 : vector<8x8x128xf32>
    %145 = vector.extract_strided_slice %123 {offsets = [3, 0, 0], sizes = [8, 8, 128], strides = [1, 1, 1]} : vector<14x8x128xf32> to vector<8x8x128xf32>
    %146 = vector.extract_strided_slice %11 {offsets = [23, 0], sizes = [1, 128], strides = [1, 1]} : vector<49x128xf32> to vector<1x128xf32>
    %147 = vector.shape_cast %146 : vector<1x128xf32> to vector<128xf32>
    %148 = vector.shape_cast %147 : vector<128xf32> to vector<1x1x128xf32>
    %149 = vector.broadcast %148 : vector<1x1x128xf32> to vector<8x8x128xf32>
    %150 = arith.mulf %149, %145 : vector<8x8x128xf32>
    %151 = arith.addf %137, %150 : vector<8x8x128xf32>
    %152 = vector.extract_strided_slice %123 {offsets = [4, 0, 0], sizes = [8, 8, 128], strides = [1, 1, 1]} : vector<14x8x128xf32> to vector<8x8x128xf32>
    %153 = vector.extract_strided_slice %11 {offsets = [30, 0], sizes = [1, 128], strides = [1, 1]} : vector<49x128xf32> to vector<1x128xf32>
    %154 = vector.shape_cast %153 : vector<1x128xf32> to vector<128xf32>
    %155 = vector.shape_cast %154 : vector<128xf32> to vector<1x1x128xf32>
    %156 = vector.broadcast %155 : vector<1x1x128xf32> to vector<8x8x128xf32>
    %157 = arith.mulf %156, %152 : vector<8x8x128xf32>
    %158 = arith.addf %144, %157 : vector<8x8x128xf32>
    %159 = vector.extract_strided_slice %123 {offsets = [5, 0, 0], sizes = [8, 8, 128], strides = [1, 1, 1]} : vector<14x8x128xf32> to vector<8x8x128xf32>
    %160 = vector.extract_strided_slice %11 {offsets = [37, 0], sizes = [1, 128], strides = [1, 1]} : vector<49x128xf32> to vector<1x128xf32>
    %161 = vector.shape_cast %160 : vector<1x128xf32> to vector<128xf32>
    %162 = vector.shape_cast %161 : vector<128xf32> to vector<1x1x128xf32>
    %163 = vector.broadcast %162 : vector<1x1x128xf32> to vector<8x8x128xf32>
    %164 = arith.mulf %163, %159 : vector<8x8x128xf32>
    %165 = arith.addf %151, %164 : vector<8x8x128xf32>
    %166 = vector.extract_strided_slice %123 {offsets = [6, 0, 0], sizes = [8, 8, 128], strides = [1, 1, 1]} : vector<14x8x128xf32> to vector<8x8x128xf32>
    %167 = vector.extract_strided_slice %11 {offsets = [44, 0], sizes = [1, 128], strides = [1, 1]} : vector<49x128xf32> to vector<1x128xf32>
    %168 = vector.shape_cast %167 : vector<1x128xf32> to vector<128xf32>
    %169 = vector.shape_cast %168 : vector<128xf32> to vector<1x1x128xf32>
    %170 = vector.broadcast %169 : vector<1x1x128xf32> to vector<8x8x128xf32>
    %171 = arith.mulf %170, %166 : vector<8x8x128xf32>
    %172 = arith.addf %158, %171 : vector<8x8x128xf32>
    %c0_31 = arith.constant 0 : index
    %c3_32 = arith.constant 3 : index
    %c0_33 = arith.constant 0 : index
    %173 = vector.load %arg6[%c0_31, %c3_32, %c0_33] : memref<14x14x128xf32, #tpu.memory_space<vmem>>, vector<14x8x128xf32>
    %174 = vector.extract_strided_slice %173 {offsets = [0, 0, 0], sizes = [8, 8, 128], strides = [1, 1, 1]} : vector<14x8x128xf32> to vector<8x8x128xf32>
    %175 = vector.extract_strided_slice %11 {offsets = [3, 0], sizes = [1, 128], strides = [1, 1]} : vector<49x128xf32> to vector<1x128xf32>
    %176 = vector.shape_cast %175 : vector<1x128xf32> to vector<128xf32>
    %177 = vector.shape_cast %176 : vector<128xf32> to vector<1x1x128xf32>
    %178 = vector.broadcast %177 : vector<1x1x128xf32> to vector<8x8x128xf32>
    %179 = arith.mulf %178, %174 : vector<8x8x128xf32>
    %180 = arith.addf %165, %179 : vector<8x8x128xf32>
    %181 = vector.extract_strided_slice %173 {offsets = [1, 0, 0], sizes = [8, 8, 128], strides = [1, 1, 1]} : vector<14x8x128xf32> to vector<8x8x128xf32>
    %182 = vector.extract_strided_slice %11 {offsets = [10, 0], sizes = [1, 128], strides = [1, 1]} : vector<49x128xf32> to vector<1x128xf32>
    %183 = vector.shape_cast %182 : vector<1x128xf32> to vector<128xf32>
    %184 = vector.shape_cast %183 : vector<128xf32> to vector<1x1x128xf32>
    %185 = vector.broadcast %184 : vector<1x1x128xf32> to vector<8x8x128xf32>
    %186 = arith.mulf %185, %181 : vector<8x8x128xf32>
    %187 = arith.addf %172, %186 : vector<8x8x128xf32>
    %188 = vector.extract_strided_slice %173 {offsets = [2, 0, 0], sizes = [8, 8, 128], strides = [1, 1, 1]} : vector<14x8x128xf32> to vector<8x8x128xf32>
    %189 = vector.extract_strided_slice %11 {offsets = [17, 0], sizes = [1, 128], strides = [1, 1]} : vector<49x128xf32> to vector<1x128xf32>
    %190 = vector.shape_cast %189 : vector<1x128xf32> to vector<128xf32>
    %191 = vector.shape_cast %190 : vector<128xf32> to vector<1x1x128xf32>
    %192 = vector.broadcast %191 : vector<1x1x128xf32> to vector<8x8x128xf32>
    %193 = arith.mulf %192, %188 : vector<8x8x128xf32>
    %194 = arith.addf %180, %193 : vector<8x8x128xf32>
    %195 = vector.extract_strided_slice %173 {offsets = [4, 0, 0], sizes = [8, 8, 128], strides = [1, 1, 1]} : vector<14x8x128xf32> to vector<8x8x128xf32>
    %196 = vector.extract_strided_slice %11 {offsets = [31, 0], sizes = [1, 128], strides = [1, 1]} : vector<49x128xf32> to vector<1x128xf32>
    %197 = vector.shape_cast %196 : vector<1x128xf32> to vector<128xf32>
    %198 = vector.shape_cast %197 : vector<128xf32> to vector<1x1x128xf32>
    %199 = vector.broadcast %198 : vector<1x1x128xf32> to vector<8x8x128xf32>
    %200 = arith.mulf %199, %195 : vector<8x8x128xf32>
    %201 = arith.addf %187, %200 : vector<8x8x128xf32>
    %202 = vector.extract_strided_slice %173 {offsets = [5, 0, 0], sizes = [8, 8, 128], strides = [1, 1, 1]} : vector<14x8x128xf32> to vector<8x8x128xf32>
    %203 = vector.extract_strided_slice %11 {offsets = [38, 0], sizes = [1, 128], strides = [1, 1]} : vector<49x128xf32> to vector<1x128xf32>
    %204 = vector.shape_cast %203 : vector<1x128xf32> to vector<128xf32>
    %205 = vector.shape_cast %204 : vector<128xf32> to vector<1x1x128xf32>
    %206 = vector.broadcast %205 : vector<1x1x128xf32> to vector<8x8x128xf32>
    %207 = arith.mulf %206, %202 : vector<8x8x128xf32>
    %208 = arith.addf %194, %207 : vector<8x8x128xf32>
    %209 = vector.extract_strided_slice %173 {offsets = [6, 0, 0], sizes = [8, 8, 128], strides = [1, 1, 1]} : vector<14x8x128xf32> to vector<8x8x128xf32>
    %210 = vector.extract_strided_slice %11 {offsets = [45, 0], sizes = [1, 128], strides = [1, 1]} : vector<49x128xf32> to vector<1x128xf32>
    %211 = vector.shape_cast %210 : vector<1x128xf32> to vector<128xf32>
    %212 = vector.shape_cast %211 : vector<128xf32> to vector<1x1x128xf32>
    %213 = vector.broadcast %212 : vector<1x1x128xf32> to vector<8x8x128xf32>
    %214 = arith.mulf %213, %209 : vector<8x8x128xf32>
    %215 = arith.addf %201, %214 : vector<8x8x128xf32>
    %c0_34 = arith.constant 0 : index
    %c4 = arith.constant 4 : index
    %c0_35 = arith.constant 0 : index
    %216 = vector.load %arg6[%c0_34, %c4, %c0_35] : memref<14x14x128xf32, #tpu.memory_space<vmem>>, vector<14x8x128xf32>
    %217 = vector.extract_strided_slice %216 {offsets = [0, 0, 0], sizes = [8, 8, 128], strides = [1, 1, 1]} : vector<14x8x128xf32> to vector<8x8x128xf32>
    %218 = vector.extract_strided_slice %11 {offsets = [4, 0], sizes = [1, 128], strides = [1, 1]} : vector<49x128xf32> to vector<1x128xf32>
    %219 = vector.shape_cast %218 : vector<1x128xf32> to vector<128xf32>
    %220 = vector.shape_cast %219 : vector<128xf32> to vector<1x1x128xf32>
    %221 = vector.broadcast %220 : vector<1x1x128xf32> to vector<8x8x128xf32>
    %222 = arith.mulf %221, %217 : vector<8x8x128xf32>
    %223 = arith.addf %208, %222 : vector<8x8x128xf32>
    %224 = vector.extract_strided_slice %216 {offsets = [1, 0, 0], sizes = [8, 8, 128], strides = [1, 1, 1]} : vector<14x8x128xf32> to vector<8x8x128xf32>
    %225 = vector.extract_strided_slice %11 {offsets = [11, 0], sizes = [1, 128], strides = [1, 1]} : vector<49x128xf32> to vector<1x128xf32>
    %226 = vector.shape_cast %225 : vector<1x128xf32> to vector<128xf32>
    %227 = vector.shape_cast %226 : vector<128xf32> to vector<1x1x128xf32>
    %228 = vector.broadcast %227 : vector<1x1x128xf32> to vector<8x8x128xf32>
    %229 = arith.mulf %228, %224 : vector<8x8x128xf32>
    %230 = arith.addf %215, %229 : vector<8x8x128xf32>
    %231 = vector.extract_strided_slice %216 {offsets = [2, 0, 0], sizes = [8, 8, 128], strides = [1, 1, 1]} : vector<14x8x128xf32> to vector<8x8x128xf32>
    %232 = vector.extract_strided_slice %11 {offsets = [18, 0], sizes = [1, 128], strides = [1, 1]} : vector<49x128xf32> to vector<1x128xf32>
    %233 = vector.shape_cast %232 : vector<1x128xf32> to vector<128xf32>
    %234 = vector.shape_cast %233 : vector<128xf32> to vector<1x1x128xf32>
    %235 = vector.broadcast %234 : vector<1x1x128xf32> to vector<8x8x128xf32>
    %236 = arith.mulf %235, %231 : vector<8x8x128xf32>
    %237 = arith.addf %223, %236 : vector<8x8x128xf32>
    %238 = vector.extract_strided_slice %216 {offsets = [3, 0, 0], sizes = [8, 8, 128], strides = [1, 1, 1]} : vector<14x8x128xf32> to vector<8x8x128xf32>
    %239 = vector.extract_strided_slice %11 {offsets = [25, 0], sizes = [1, 128], strides = [1, 1]} : vector<49x128xf32> to vector<1x128xf32>
    %240 = vector.shape_cast %239 : vector<1x128xf32> to vector<128xf32>
    %241 = vector.shape_cast %240 : vector<128xf32> to vector<1x1x128xf32>
    %242 = vector.broadcast %241 : vector<1x1x128xf32> to vector<8x8x128xf32>
    %243 = arith.mulf %242, %238 : vector<8x8x128xf32>
    %244 = arith.addf %230, %243 : vector<8x8x128xf32>
    %245 = vector.extract_strided_slice %216 {offsets = [4, 0, 0], sizes = [8, 8, 128], strides = [1, 1, 1]} : vector<14x8x128xf32> to vector<8x8x128xf32>
    %246 = vector.extract_strided_slice %11 {offsets = [32, 0], sizes = [1, 128], strides = [1, 1]} : vector<49x128xf32> to vector<1x128xf32>
    %247 = vector.shape_cast %246 : vector<1x128xf32> to vector<128xf32>
    %248 = vector.shape_cast %247 : vector<128xf32> to vector<1x1x128xf32>
    %249 = vector.broadcast %248 : vector<1x1x128xf32> to vector<8x8x128xf32>
    %250 = arith.mulf %249, %245 : vector<8x8x128xf32>
    %251 = arith.addf %237, %250 : vector<8x8x128xf32>
    %252 = vector.extract_strided_slice %216 {offsets = [5, 0, 0], sizes = [8, 8, 128], strides = [1, 1, 1]} : vector<14x8x128xf32> to vector<8x8x128xf32>
    %253 = vector.extract_strided_slice %11 {offsets = [39, 0], sizes = [1, 128], strides = [1, 1]} : vector<49x128xf32> to vector<1x128xf32>
    %254 = vector.shape_cast %253 : vector<1x128xf32> to vector<128xf32>
    %255 = vector.shape_cast %254 : vector<128xf32> to vector<1x1x128xf32>
    %256 = vector.broadcast %255 : vector<1x1x128xf32> to vector<8x8x128xf32>
    %257 = arith.mulf %256, %252 : vector<8x8x128xf32>
    %258 = arith.addf %244, %257 : vector<8x8x128xf32>
    %259 = vector.extract_strided_slice %216 {offsets = [6, 0, 0], sizes = [8, 8, 128], strides = [1, 1, 1]} : vector<14x8x128xf32> to vector<8x8x128xf32>
    %260 = vector.extract_strided_slice %11 {offsets = [46, 0], sizes = [1, 128], strides = [1, 1]} : vector<49x128xf32> to vector<1x128xf32>
    %261 = vector.shape_cast %260 : vector<1x128xf32> to vector<128xf32>
    %262 = vector.shape_cast %261 : vector<128xf32> to vector<1x1x128xf32>
    %263 = vector.broadcast %262 : vector<1x1x128xf32> to vector<8x8x128xf32>
    %264 = arith.mulf %263, %259 : vector<8x8x128xf32>
    %265 = arith.addf %251, %264 : vector<8x8x128xf32>
    %c0_36 = arith.constant 0 : index
    %c5 = arith.constant 5 : index
    %c0_37 = arith.constant 0 : index
    %266 = vector.load %arg6[%c0_36, %c5, %c0_37] : memref<14x14x128xf32, #tpu.memory_space<vmem>>, vector<14x8x128xf32>
    %267 = vector.extract_strided_slice %266 {offsets = [0, 0, 0], sizes = [8, 8, 128], strides = [1, 1, 1]} : vector<14x8x128xf32> to vector<8x8x128xf32>
    %268 = vector.extract_strided_slice %11 {offsets = [5, 0], sizes = [1, 128], strides = [1, 1]} : vector<49x128xf32> to vector<1x128xf32>
    %269 = vector.shape_cast %268 : vector<1x128xf32> to vector<128xf32>
    %270 = vector.shape_cast %269 : vector<128xf32> to vector<1x1x128xf32>
    %271 = vector.broadcast %270 : vector<1x1x128xf32> to vector<8x8x128xf32>
    %272 = arith.mulf %271, %267 : vector<8x8x128xf32>
    %273 = arith.addf %258, %272 : vector<8x8x128xf32>
    %274 = vector.extract_strided_slice %266 {offsets = [1, 0, 0], sizes = [8, 8, 128], strides = [1, 1, 1]} : vector<14x8x128xf32> to vector<8x8x128xf32>
    %275 = vector.extract_strided_slice %11 {offsets = [12, 0], sizes = [1, 128], strides = [1, 1]} : vector<49x128xf32> to vector<1x128xf32>
    %276 = vector.shape_cast %275 : vector<1x128xf32> to vector<128xf32>
    %277 = vector.shape_cast %276 : vector<128xf32> to vector<1x1x128xf32>
    %278 = vector.broadcast %277 : vector<1x1x128xf32> to vector<8x8x128xf32>
    %279 = arith.mulf %278, %274 : vector<8x8x128xf32>
    %280 = arith.addf %265, %279 : vector<8x8x128xf32>
    %281 = vector.extract_strided_slice %266 {offsets = [2, 0, 0], sizes = [8, 8, 128], strides = [1, 1, 1]} : vector<14x8x128xf32> to vector<8x8x128xf32>
    %282 = vector.extract_strided_slice %11 {offsets = [19, 0], sizes = [1, 128], strides = [1, 1]} : vector<49x128xf32> to vector<1x128xf32>
    %283 = vector.shape_cast %282 : vector<1x128xf32> to vector<128xf32>
    %284 = vector.shape_cast %283 : vector<128xf32> to vector<1x1x128xf32>
    %285 = vector.broadcast %284 : vector<1x1x128xf32> to vector<8x8x128xf32>
    %286 = arith.mulf %285, %281 : vector<8x8x128xf32>
    %287 = arith.addf %273, %286 : vector<8x8x128xf32>
    %288 = vector.extract_strided_slice %266 {offsets = [3, 0, 0], sizes = [8, 8, 128], strides = [1, 1, 1]} : vector<14x8x128xf32> to vector<8x8x128xf32>
    %289 = vector.extract_strided_slice %11 {offsets = [26, 0], sizes = [1, 128], strides = [1, 1]} : vector<49x128xf32> to vector<1x128xf32>
    %290 = vector.shape_cast %289 : vector<1x128xf32> to vector<128xf32>
    %291 = vector.shape_cast %290 : vector<128xf32> to vector<1x1x128xf32>
    %292 = vector.broadcast %291 : vector<1x1x128xf32> to vector<8x8x128xf32>
    %293 = arith.mulf %292, %288 : vector<8x8x128xf32>
    %294 = arith.addf %280, %293 : vector<8x8x128xf32>
    %295 = vector.extract_strided_slice %266 {offsets = [4, 0, 0], sizes = [8, 8, 128], strides = [1, 1, 1]} : vector<14x8x128xf32> to vector<8x8x128xf32>
    %296 = vector.extract_strided_slice %11 {offsets = [33, 0], sizes = [1, 128], strides = [1, 1]} : vector<49x128xf32> to vector<1x128xf32>
    %297 = vector.shape_cast %296 : vector<1x128xf32> to vector<128xf32>
    %298 = vector.shape_cast %297 : vector<128xf32> to vector<1x1x128xf32>
    %299 = vector.broadcast %298 : vector<1x1x128xf32> to vector<8x8x128xf32>
    %300 = arith.mulf %299, %295 : vector<8x8x128xf32>
    %301 = arith.addf %287, %300 : vector<8x8x128xf32>
    %302 = vector.extract_strided_slice %266 {offsets = [5, 0, 0], sizes = [8, 8, 128], strides = [1, 1, 1]} : vector<14x8x128xf32> to vector<8x8x128xf32>
    %303 = vector.extract_strided_slice %11 {offsets = [40, 0], sizes = [1, 128], strides = [1, 1]} : vector<49x128xf32> to vector<1x128xf32>
    %304 = vector.shape_cast %303 : vector<1x128xf32> to vector<128xf32>
    %305 = vector.shape_cast %304 : vector<128xf32> to vector<1x1x128xf32>
    %306 = vector.broadcast %305 : vector<1x1x128xf32> to vector<8x8x128xf32>
    %307 = arith.mulf %306, %302 : vector<8x8x128xf32>
    %308 = arith.addf %294, %307 : vector<8x8x128xf32>
    %309 = vector.extract_strided_slice %266 {offsets = [6, 0, 0], sizes = [8, 8, 128], strides = [1, 1, 1]} : vector<14x8x128xf32> to vector<8x8x128xf32>
    %310 = vector.extract_strided_slice %11 {offsets = [47, 0], sizes = [1, 128], strides = [1, 1]} : vector<49x128xf32> to vector<1x128xf32>
    %311 = vector.shape_cast %310 : vector<1x128xf32> to vector<128xf32>
    %312 = vector.shape_cast %311 : vector<128xf32> to vector<1x1x128xf32>
    %313 = vector.broadcast %312 : vector<1x1x128xf32> to vector<8x8x128xf32>
    %314 = arith.mulf %313, %309 : vector<8x8x128xf32>
    %315 = arith.addf %301, %314 : vector<8x8x128xf32>
    %c0_38 = arith.constant 0 : index
    %c6 = arith.constant 6 : index
    %c0_39 = arith.constant 0 : index
    %316 = vector.load %arg6[%c0_38, %c6, %c0_39] : memref<14x14x128xf32, #tpu.memory_space<vmem>>, vector<14x8x128xf32>
    %317 = vector.extract_strided_slice %316 {offsets = [0, 0, 0], sizes = [8, 8, 128], strides = [1, 1, 1]} : vector<14x8x128xf32> to vector<8x8x128xf32>
    %318 = vector.extract_strided_slice %11 {offsets = [6, 0], sizes = [1, 128], strides = [1, 1]} : vector<49x128xf32> to vector<1x128xf32>
    %319 = vector.shape_cast %318 : vector<1x128xf32> to vector<128xf32>
    %320 = vector.shape_cast %319 : vector<128xf32> to vector<1x1x128xf32>
    %321 = vector.broadcast %320 : vector<1x1x128xf32> to vector<8x8x128xf32>
    %322 = arith.mulf %321, %317 : vector<8x8x128xf32>
    %323 = arith.addf %308, %322 : vector<8x8x128xf32>
    %324 = vector.extract_strided_slice %316 {offsets = [1, 0, 0], sizes = [8, 8, 128], strides = [1, 1, 1]} : vector<14x8x128xf32> to vector<8x8x128xf32>
    %325 = vector.extract_strided_slice %11 {offsets = [13, 0], sizes = [1, 128], strides = [1, 1]} : vector<49x128xf32> to vector<1x128xf32>
    %326 = vector.shape_cast %325 : vector<1x128xf32> to vector<128xf32>
    %327 = vector.shape_cast %326 : vector<128xf32> to vector<1x1x128xf32>
    %328 = vector.broadcast %327 : vector<1x1x128xf32> to vector<8x8x128xf32>
    %329 = arith.mulf %328, %324 : vector<8x8x128xf32>
    %330 = arith.addf %315, %329 : vector<8x8x128xf32>
    %331 = vector.extract_strided_slice %316 {offsets = [2, 0, 0], sizes = [8, 8, 128], strides = [1, 1, 1]} : vector<14x8x128xf32> to vector<8x8x128xf32>
    %332 = vector.extract_strided_slice %11 {offsets = [20, 0], sizes = [1, 128], strides = [1, 1]} : vector<49x128xf32> to vector<1x128xf32>
    %333 = vector.shape_cast %332 : vector<1x128xf32> to vector<128xf32>
    %334 = vector.shape_cast %333 : vector<128xf32> to vector<1x1x128xf32>
    %335 = vector.broadcast %334 : vector<1x1x128xf32> to vector<8x8x128xf32>
    %336 = arith.mulf %335, %331 : vector<8x8x128xf32>
    %337 = arith.addf %323, %336 : vector<8x8x128xf32>
    %338 = vector.extract_strided_slice %316 {offsets = [3, 0, 0], sizes = [8, 8, 128], strides = [1, 1, 1]} : vector<14x8x128xf32> to vector<8x8x128xf32>
    %339 = vector.extract_strided_slice %11 {offsets = [27, 0], sizes = [1, 128], strides = [1, 1]} : vector<49x128xf32> to vector<1x128xf32>
    %340 = vector.shape_cast %339 : vector<1x128xf32> to vector<128xf32>
    %341 = vector.shape_cast %340 : vector<128xf32> to vector<1x1x128xf32>
    %342 = vector.broadcast %341 : vector<1x1x128xf32> to vector<8x8x128xf32>
    %343 = arith.mulf %342, %338 : vector<8x8x128xf32>
    %344 = arith.addf %330, %343 : vector<8x8x128xf32>
    %345 = vector.extract_strided_slice %316 {offsets = [4, 0, 0], sizes = [8, 8, 128], strides = [1, 1, 1]} : vector<14x8x128xf32> to vector<8x8x128xf32>
    %346 = vector.extract_strided_slice %11 {offsets = [34, 0], sizes = [1, 128], strides = [1, 1]} : vector<49x128xf32> to vector<1x128xf32>
    %347 = vector.shape_cast %346 : vector<1x128xf32> to vector<128xf32>
    %348 = vector.shape_cast %347 : vector<128xf32> to vector<1x1x128xf32>
    %349 = vector.broadcast %348 : vector<1x1x128xf32> to vector<8x8x128xf32>
    %350 = arith.mulf %349, %345 : vector<8x8x128xf32>
    %351 = arith.addf %337, %350 : vector<8x8x128xf32>
    %352 = vector.extract_strided_slice %316 {offsets = [5, 0, 0], sizes = [8, 8, 128], strides = [1, 1, 1]} : vector<14x8x128xf32> to vector<8x8x128xf32>
    %353 = vector.extract_strided_slice %11 {offsets = [41, 0], sizes = [1, 128], strides = [1, 1]} : vector<49x128xf32> to vector<1x128xf32>
    %354 = vector.shape_cast %353 : vector<1x128xf32> to vector<128xf32>
    %355 = vector.shape_cast %354 : vector<128xf32> to vector<1x1x128xf32>
    %356 = vector.broadcast %355 : vector<1x1x128xf32> to vector<8x8x128xf32>
    %357 = arith.mulf %356, %352 : vector<8x8x128xf32>
    %358 = arith.addf %344, %357 : vector<8x8x128xf32>
    %359 = vector.extract_strided_slice %316 {offsets = [6, 0, 0], sizes = [8, 8, 128], strides = [1, 1, 1]} : vector<14x8x128xf32> to vector<8x8x128xf32>
    %360 = vector.extract_strided_slice %11 {offsets = [48, 0], sizes = [1, 128], strides = [1, 1]} : vector<49x128xf32> to vector<1x128xf32>
    %361 = vector.shape_cast %360 : vector<1x128xf32> to vector<128xf32>
    %362 = vector.shape_cast %361 : vector<128xf32> to vector<1x1x128xf32>
    %363 = vector.broadcast %362 : vector<1x1x128xf32> to vector<8x8x128xf32>
    %364 = arith.mulf %363, %359 : vector<8x8x128xf32>
    %365 = arith.addf %351, %364 : vector<8x8x128xf32>
    %366 = arith.addf %358, %365 : vector<8x8x128xf32>
    %c0_40 = arith.constant 0 : index
    %c0_41 = arith.constant 0 : index
    %c0_42 = arith.constant 0 : index
    %c0_43 = arith.constant 0 : index
    %367 = vector.load %arg5[%c0_40, %c0_41, %c0_42, %c0_43] : memref<1x8x8x128xf32, #tpu.memory_space<vmem>>, vector<1x8x8x128xf32>
    %368 = vector.shape_cast %367 : vector<1x8x8x128xf32> to vector<8x8x128xf32>
    %369 = vector.shape_cast %366 : vector<8x8x128xf32> to vector<1x8x8x128xf32>
    tpu.vector_store %arg5[%c0_40, %c0_41, %c0_42, %c0_43], %369 {strides = array<i32>} : memref<1x8x8x128xf32, #tpu.memory_space<vmem>>, vector<1x8x8x128xf32>,
    return
  }
  func.func @transform_0(%arg0: i32, %arg1: i32) -> (i32, i32, i32, i32) {
    %c0_i32 = arith.constant 0 : i32
    %c0_i32_0 = arith.constant 0 : i32
    %c0_i32_1 = arith.constant 0 : i32
    return %arg0, %c0_i32, %c0_i32_0, %arg1 : i32, i32, i32, i32
  }
  func.func @transform_1(%arg0: i32, %arg1: i32) -> (i32, i32) {
    %c0_i32 = arith.constant 0 : i32
    %c0_i32_0 = arith.constant 0 : i32
    return %c0_i32, %arg1 : i32, i32
  }
  func.func @transform_2(%arg0: i32, %arg1: i32) -> (i32, i32) {
    %c0_i32 = arith.constant 0 : i32
    %c0_i32_0 = arith.constant 0 : i32
    return %c0_i32, %arg1 : i32, i32
  }
  func.func @transform_3(%arg0: i32, %arg1: i32) -> (i32, i32, i32, i32) {
    %c0_i32 = arith.constant 0 : i32
    %c0_i32_0 = arith.constant 0 : i32
    %c0_i32_1 = arith.constant 0 : i32
    return %arg0, %c0_i32, %c0_i32_0, %arg1 : i32, i32, i32, i32
  }
}

</mosaic_0001>

<bundles_post_ra>
// kernel: tpu_custom_call.1
= control target key start
LH: loop header
LB: loop body
LE: loop exit
PB: predicated region body
PF: predicated region fallthrough
CT: control target
= control target key end

     0   :  { %8 = vsyncpa [#allocation4], 0  ;;  %s3428_s0 = inlined_call_operand.hbm [shape: f32[2,8,8,128], index: 0, kind: input, shape index: {}]   ;;  %s3429_s1 = inlined_call_operand.hbm [shape: f32[49,128], index: 1, kind: input, shape index: {}]   ;;  %s3430_s2 = inlined_call_operand.vmem [shape: f32[1,128], index: 2, kind: input, shape index: {}]   ;;  %s3431_s3 = inlined_call_operand.hbm [shape: f32[2,8,8,128], index: 3, kind: output, shape index: {}]  }
   0x1   :  { %10 = vsyncpa [#allocation4 + $0x1], 0 }
   0x2   :  { %11 = vsyncpa [#allocation7], 0 }
   0x3   :  { %12 = vsyncpa [#allocation5], 0 }
   0x4   :  { %14 = vsyncpa [#allocation5 + $0x1], 0  ;;  %s1799_s12 = smov 0   ;;  %s1801_s13 = smov 0  }
   0x5   :  { %s1803_s14 = smov 0   ;;  %s1805_s15 = smov 0  }
   0x6   :  { %s1807_s16 = smov 0   ;;  %s1809_s17 = smov 0  }
   0x7 LB: > { %s1513_s18 = sadd.s32 4294967295, %s1769_s17   ;;  %s1514_s19 = sadd.s32 4294967294, %s1769_s17   ;;  %s1769_s17 = sphi %s1809_s17, %s20_s17   ;;  %s1765_s16 = sphi %s1807_s16, %s4024_s16   ;;  %s1761_s15 = sphi %s1805_s15, %s4023_s15   ;;  %s1757_s14 = sphi %s1803_s14, %s4022_s14   ;;  %s1753_s13 = sphi %s1801_s13, %s4021_s13   ;;  %s1749_s12 = sphi %s1799_s12, %s4020_s12  }
   0x8   : > { %p54_p0 = scmp.ne.s32.totalorder %s1753_s13, %s1749_s12  ;;  %p1833_p1 = scmp.eq.s32.totalorder %s1513_s18, 0 }
   0x9   : > { %p1837_p2 = scmp.eq.s32.totalorder %s1513_s18, 1  ;;  %p138_p3 = scmp.eq.s32.totalorder %s1514_s19, 1 }
   0xa   : > { %s3625_s20 = scalar_select %p1833_p1, 1, 0 }
   0xb   : > { %s3626_s21 = scalar_select %p1837_p2, 1, 0 }
   0xc   : > { %p1843_p4 = por %p1833_p1, %p54_p0  ;;  %p1515_p5 = scmp.ge.s32.totalorder %s1769_s17, 1 }
   0xd   : > { %p1848_p6 = por %p138_p3, %p54_p0  ;;  %p145_p7 = scmp.lt.s32.totalorder %s1769_s17, 3 }
   0xe   : > { %s3627_s22 = scalar_select %p1843_p4, 1, 0 }
   0xf   : > { %s3628_s23 = scalar_select %p1848_p6, 1, 0 }
  0x10   : > { %p1853_p8 = pnand %p1515_p5, %p145_p7  ;;  %s1771_s25 = smov [#allocation6]  }
  0x11   : > { %s159_s26 = sshll.u32 %s1771_s25, 4  ;;  %s32_s28 = sadd.s32 1, %s1765_s16  ;;  %s160_s26 = int_to_ptr.vmem [resolvable:$true] %s159_s26 }
  0x12   : > { %s3629_s24 = scalar_select %p1853_p8, 1, 0 }
  0x13   : > { %p1543_p9 = pneg %p1853_p8  ;;  %s1625_s4 = scalar_lea.hbm %s3429_s1, 896 }
  0x14   : > { %p1626_p12 = scmp.ne.s32.totalorder %s3429_s1, %s1625_s4  ;;  %p1632_p5 = scmp.lt.u32.totalorder %s1625_s4, %s3429_s1 }
  0x15   : > { %p1862_p11 = pnand %p1543_p9, %p1833_p1 }
  0x17   : > { %p1627_p13 = pneg %p1862_p11 }
  0x19   : > { %p1628_p0 = pnand %p1627_p13, %p1626_p12 }
  0x1b   : > { %p1629_p3 = pneg %p1628_p0 }
  0x1d   : > { %p1634_p7 = pnand %p1632_p5, %p1629_p3 }
  0x1f   : > { %1637 = shalt.err (!%p1634_p7)
}
  0x20   : > { %s1638_s9 = scalar_lea.vmem %s160_s26, 896  ;;  %p1646_p1 = scmp.lt.s32.totalorder %s160_s26, %s160_s26 }
  0x21   : > { %p1639_p9 = scmp.ne.s32.totalorder %s160_s26, %s1638_s9  ;;  %p1647_p4 = scmp.lt.s32.totalorder %s1638_s9, %s1638_s9 }
  0x23   : > { %p1641_p10 = pnand %p1639_p9, %p1627_p13  ;;  %p1648_p8 = por %p1647_p4, %p1646_p1 }
  0x25   : > { %p1642_p6 = pneg %p1641_p10 }
  0x27   : > { %p1649_p2 = pnand %p1648_p8, %p1642_p6 }
  0x29   : > { %1652 = shalt.err (!%p1649_p2)
}
  0x2a   : > { %s1772_s10 = smov 128   ;;  %s1773_s11 = smov 8  }
  0x2b   : > { %1546 = dma.hbm_to_vmem [thread:$0]  (!%p1862_p11), %s3429_s1, 896, %s160_s26, [#allocation7], %s1772_s10, %s1772_s10, %s1773_s11  }
  0x2c   : > { %p34_p1 = scmp.ge.s32.totalorder %s32_s28, 2  ;;  %s41_s25 = sadd.s32 1, %s1757_s14 }
  0x2d   : > { %p48_p2 = scmp.ne.s32.totalorder %s1757_s14, %s1753_s13  ;;  %p49_p4 = scmp.eq.s32.totalorder %s1769_s17, 0 }
  0x2e   : > { %s4026_s28 = smov (%p34_p1, %s32_s28), 0  ;;  %p3632_p8 = scmp.ne.s32.totalorder %s3626_s21, 0 }
  0x2f   : > { %p1892_p6 = por %p49_p4, %p48_p2  ;;  %s36_s30 = ssub.s32 %s1765_s16, %s4026_s28 }
  0x30   : > { %p1898_p10 = por %p3632_p8, %p48_p2  ;;  %p1556_p12 = scmp.lt.s32.totalorder %s1769_s17, 2 }
  0x31   : > { %p39_p11 = scmp.eq.s32.totalorder %s36_s30, 0  ;;  %s179_s26 = sand.u32 1, %s1757_s14  }
  0x32   : > { %s1519_s4 = sshll.u32 %s179_s26, 6  ;;  %s1533_s6 = sshll.u32 %s1765_s16, 10 }
  0x33   : > { %s1907_s5 = scalar_select %p39_p11, %s1757_s14, %s41_s25  }
  0x34   : > { %s1913_s9 = scalar_lea.hbm %s3428_s0, %s1533_s6  ;;  %s183_s21 = scalar_lea.vmem [#allocation3], %s1519_s4 }
  0x35   : > { %s191_s18 = sshll.u32 %s183_s21, 4  ;;  %p1919_p13 = pnand %p1556_p12, %p1892_p6  ;;  %s1915_s18 = int_to_ptr.vmem [resolvable:$true] %s191_s18 }
  0x36   : > { %s1923_s25 = scalar_lea.sflag [#allocation4], %s179_s26  ;;  %s1653_s30 = scalar_lea.hbm %s1913_s9, 1024 }
  0x37   : > { %p1654_p0 = scmp.ne.s32.totalorder %s1913_s9, %s1653_s30  ;;  %p1655_p3 = pneg %p1919_p13 }
  0x38   : > { %s1658_s29 = scalar_lea.hbm %s3428_s0, 2048  ;;  %p1659_p9 = scmp.lt.u32.totalorder %s1913_s9, %s3428_s0 }
  0x39   : > { %p1656_p5 = pnand %p1655_p3, %p1654_p0  ;;  %p1660_p1 = scmp.lt.u32.totalorder %s1658_s29, %s1653_s30 }
  0x3a   : > { %p1662_p4 = scmp.lt.u32.totalorder %s1653_s30, %s1913_s9 }
  0x3b   : > { %p1657_p7 = pneg %p1656_p5  ;;  %p1661_p2 = por %p1660_p1, %p1659_p9 }
  0x3d   : > { %p1663_p6 = por %p1662_p4, %p1661_p2 }
  0x3f   : > { %p1664_p8 = pnand %p1663_p6, %p1657_p7 }
  0x41   : > { %1667 = shalt.err (!%p1664_p8)
}
  0x42   : > { %s1668_s26 = scalar_lea.vmem %s1915_s18, 1024  ;;  %s1774_s21 = smov [#allocation3]  }
  0x43   : > { %p1669_p12 = scmp.ne.s32.totalorder %s1915_s18, %s1668_s26  ;;  %s1673_s4 = sshll.u32 %s1774_s21, 4  ;;  %s1674_s4 = int_to_ptr.vmem [resolvable:$false] %s1673_s4 }
  0x44   : > { %s1675_s6 = scalar_lea.vmem %s1674_s4, 2048  ;;  %p1676_p5 = scmp.lt.s32.totalorder %s1915_s18, %s1674_s4 }
  0x45   : > { %p1671_p11 = pnand %p1669_p12, %p1655_p3  ;;  %p1677_p9 = scmp.lt.s32.totalorder %s1675_s6, %s1668_s26 }
  0x47   : > { %p1672_p0 = pneg %p1671_p11  ;;  %p1678_p1 = por %p1677_p9, %p1676_p5 }
  0x49   : > { %p1679_p2 = pnand %p1678_p1, %p1672_p0 }
  0x4b   : > { %1682 = shalt.err (!%p1679_p2)
}
  0x4c   : > { %1550 = dma.hbm_to_vmem [thread:$0]  (!%p1919_p13), %s1913_s9, 1024, %s1915_s18, %s1923_s25, %s1772_s10, %s1772_s10, %s1773_s11  }
  0x4d   : > { %p3635_p3 = scmp.ne.s32.totalorder %s3629_s24, 0 }
  0x4f   : > { %203 = sbr.rel (%p3635_p3) target bundleno = 361 (0x169), region = 32 }
  0x56   : > { %s1957_s30 = sand.u32 1, %s1753_s13   ;;  %p3636_p7 = scmp.ne.s32.totalorder %s3627_s22, 0 }
  0x57   : > { %s1523_s29 = sshll.u32 %s1957_s30, 6  ;;  %s206_s7 = scalar_lea.sflag [#allocation4], %s1957_s30 }
  0x58   : > { %s1963_s19 = scalar_lea.vmem [#allocation3], %s1523_s29 }
  0x59   : > { %1736 = dma.done.wait (%p3636_p7), %s206_s7, 1024  }
  0x5a   : > { %1738 = vsyncadd (%p3636_p7), %s206_s7, 4294966272  ;;  %p3637_p13 = scmp.ne.s32.totalorder %s3625_s20, 0 }
  0x5c   : > { %1740 = dma.done.wait (%p3637_p13), [#allocation7], 896  }
  0x5d   : > { %1742 = vsyncadd (%p3637_p13), [#allocation7], 4294966400  ;;  %v1775_v0 = vmov 0.0   ;;  %v297_v1 = vlaneseq  ;;  %v1979_v6 = vld [vmem:[#allocation6 + $0x8] sm:$0xff]  ;;  %v1981_v7 = vld [vmem:[#allocation6] sm:$0xff]  ;;  %s2886_s24 = scalar_lea.vmem [#allocation8], %s1523_s29 }
  0x5e   : > { %250 = vst [vmem:[#allocation2] sm:$0xff] %v1775_v0  ;;  %251 = vst [vmem:[#allocation2 + $0x8] sm:$0x3f] %v1775_v0  ;;  %v1983_v8 = vld [vmem:[#allocation6 + $0x10] sm:$0xff]  ;;  %v2042_v34 = vld [vmem:[%s1963_s19] sm:$0xff]  ;;  %s1404_s10 = sshll.u32 %s2886_s24, 4  ;;  %s3373_s10 = int_to_ptr.vmem [resolvable:$true] %s1404_s10 }
  0x5f   : > { %252 = vst [vmem:[#allocation2 + $0x10] sm:$0xff] %v1775_v0  ;;  %253 = vst [vmem:[#allocation2 + $0x18] sm:$0x3f] %v1775_v0  ;;  %v298_v2 = vshrl.u32 %v297_v1, 7  ;;  %v2044_v35 = vld [vmem:[#allocation6 + $0x18] sm:$0xff]  ;;  %v2058_v40 = vld [vmem:[%s1963_s19 + $0x8] sm:$0xff] }
  0x60   : > { %254 = vst [vmem:[#allocation2 + $0x20] sm:$0xff] %v1775_v0  ;;  %255 = vst [vmem:[#allocation2 + $0x28] sm:$0x3f] %v1775_v0  ;;  %v296_v39 = vadd.f32 1.0, %v2044_v35  ;;  %v2061_v41 = vld [vmem:[%s1963_s19 + $0x10] sm:$0xff]  ;;  %v2063_v42 = vld [vmem:[#allocation6 + $0x20] sm:$0xff] }
  0x61   : > { %257 = vst [vmem:[#allocation2 + $0xb0] sm:$0xff] %v1775_v0  ;;  %258 = vst [vmem:[#allocation2 + $0xb8] sm:$0x3f] %v1775_v0  ;;  %v1973_v3 = vsub.s32 7, %v298_v2  ;;  %v1975_v4 = vsub.s32 2, %v298_v2  ;;  %v1977_v5 = vsub.s32 1, %v298_v2 }
  0x62   : > { %259 = vst [vmem:[#allocation2 + $0xc0] sm:$0xff] %v1775_v0  ;;  %260 = vst [vmem:[#allocation2 + $0xc8] sm:$0x3f] %v1775_v0  ;;  %v1985_v9 = vsub.s32 0, %v298_v2  ;;  %v1987_v10 = vsub.s32 3, %v298_v2  ;;  %v1989_v14 = vsub.s32 6, %v298_v2 }
  0x63   : > { %261 = vst [vmem:[#allocation2 + $0xd0] sm:$0xff] %v1775_v0  ;;  %262 = vst [vmem:[#allocation2 + $0xd8] sm:$0x3f] %v1775_v0  ;;  %v1991_v15 = vsub.s32 5, %v298_v2  ;;  %v1993_v16 = vsub.s32 4, %v298_v2  ;;  %v1997_v18 = vrot.slane %v1981_v7, %v1977_v5  ;;  %v2005_v20 = vrot.slane %v1979_v6, %v1973_v3  ;;  %v2083_v48 = vld [vmem:[%s1963_s19 + $0x18] sm:$0xff] }
  0x64   : > { %264 = vst [vmem:[#allocation2 + $0x30] sm:$0x7] %v1775_v0  ;;  %265 = vst [vmem:[#allocation2 + $0x40] sm:$0x7] %v1775_v0  ;;  %v2001_v19 = vrot.slane %v1979_v6, %v1985_v9  ;;  %v2009_v21 = vrot.slane %v1981_v7, %v1975_v4  ;;  %v2013_v25 = vrot.slane %v1979_v6, %v1977_v5  ;;  %v2086_v49 = vld [vmem:[%s1963_s19 + $0x20] sm:$0xff]  ;;  %v2103_v54 = vld [vmem:[%s1963_s19 + $0x28] sm:$0xff] }
  0x65   : > { %266 = vst [vmem:[#allocation2 + $0x50] sm:$0x7] %v1775_v0  ;;  %267 = vst [vmem:[#allocation2 + $0x60] sm:$0x7] %v1775_v0  ;;  %v469_v11 = vld [vmem:[#allocation2 + $0x1] sm:$0xff]  ;;  %v2017_v26 = vrot.slane %v1983_v8, %v1985_v9  ;;  %v2021_v27 = vrot.slane %v1981_v7, %v1987_v10  ;;  %v2025_v28 = vrot.slane %v1981_v7, %v1985_v9  ;;  %v2106_v55 = vld [vmem:[%s1963_s19 + $0x30] sm:$0xff] }
  0x66   : > { %268 = vst [vmem:[#allocation2 + $0x70] sm:$0x7] %v1775_v0  ;;  %269 = vst [vmem:[#allocation2 + $0x80] sm:$0x7] %v1775_v0  ;;  %v470_v12 = vld [vmem:[#allocation2 + $0x11] sm:$0xff]  ;;  %v623_v17 = vld [vmem:[#allocation2 + $0x2] sm:$0xff]  ;;  %v2030_v30 = vmul.f32 %v1997_v18, %v469_v11  ;;  %v2080_v47 = vrot.slane %v2044_v35, %v1993_v16  ;;  %v2098_v53 = vrot.slane %v296_v39, %v1985_v9 }
  0x67   : > { %270 = vst [vmem:[#allocation2 + $0x90] sm:$0x7] %v1775_v0  ;;  %271 = vst [vmem:[#allocation2 + $0xa0] sm:$0x7] %v1775_v0  ;;  %v471_v13 = vld [vmem:[#allocation2 + $0x21] sm:$0xff]  ;;  %v624_v22 = vld [vmem:[#allocation2 + $0x12] sm:$0xff]  ;;  %v2033_v31 = vmul.f32 %v1997_v18, %v470_v12  ;;  %v2039_v33 = vmul.f32 %v2001_v19, %v470_v12  ;;  %v2053_v38 = vmul.f32 %v2009_v21, %v623_v17 }
  0x68   : > { %272 = vst [vmem:[#allocation2 + $0x3b] sm:$0x7] %v1775_v0  ;;  %273 = vst [vmem:[#allocation2 + $0x4b] sm:$0x7] %v1775_v0  ;;  %v625_v23 = vld [vmem:[#allocation2 + $0x22] sm:$0xff]  ;;  %v2027_v29 = vld [vmem:[#allocation2 + $0x13] sm:$0xff]  ;;  %v2036_v32 = vmul.f32 %v1997_v18, %v471_v13  ;;  %v2047_v36 = vmul.f32 %v2001_v19, %v471_v13  ;;  %v2050_v37 = vmul.f32 %v2005_v20, %v471_v13 }
  0x69   : > { %274 = vst [vmem:[#allocation2 + $0x5b] sm:$0x7] %v1775_v0  ;;  %275 = vst [vmem:[#allocation2 + $0x6b] sm:$0x7] %v1775_v0  ;;  %v777_v24 = vld [vmem:[#allocation2 + $0x3] sm:$0xff]  ;;  %v2068_v44 = vmul.f32 %v2009_v21, %v624_v22  ;;  %v2071_v45 = vmul.f32 %v2009_v21, %v625_v23  ;;  %v2074_v46 = vmul.f32 %v2013_v25, %v624_v22  ;;  %v2109_v56 = vld [vmem:[%s1963_s19 + $0x38] sm:$0xff] }
  0x6a   : > { %276 = vst [vmem:[#allocation2 + $0x7b] sm:$0x7] %v1775_v0  ;;  %277 = vst [vmem:[#allocation2 + $0x8b] sm:$0x7] %v1775_v0  ;;  %v2065_v43 = vld [vmem:[#allocation2 + $0x23] sm:$0xff]  ;;  %v2089_v50 = vmul.f32 %v2013_v25, %v625_v23  ;;  %v2092_v51 = vmul.f32 %v2017_v26, %v625_v23  ;;  %v2095_v52 = vmul.f32 %v2021_v27, %v777_v24  ;;  %v2125_v60 = vmul.f32 0.0, %v2080_v47 }
  0x6b   : > { %278 = vst [vmem:[#allocation2 + $0x9b] sm:$0x7] %v1775_v0  ;;  %279 = vst [vmem:[#allocation2 + $0xab] sm:$0x7] %v1775_v0  ;;  %v2113_v57 = vmul.f32 %v2021_v27, %v2027_v29  ;;  %v2118_v58 = vld [vmem:[%s3430_s2] ss:$0 sm:$0xff]  ;;  %v2122_v59 = vrot.slane %v1981_v7, %v1973_v3  ;;  %v2129_v61 = vrot.slane %v2063_v42, %v1987_v10 }
  0x6c   : > { %3638 = vst [vmem:[#allocation12_spill] sm:$0xff] %v1973_v3  ;;  %3639 = vst [vmem:[#allocation13_spill] sm:$0xff] %v1975_v4  ;;  %v2136_v62 = vmul.f32 %v2021_v27, %v2065_v43  ;;  %v301_v63 = vmul.f32 %v2098_v53, %v2042_v34  ;;  %v2142_v0 = vrot.slane %v1979_v6, %v1989_v14  ;;  %v480_v2 = vld [vmem:[#allocation2 + $0xb1] sm:$0xff]  ;;  %v341_v11 = vmul.f32 0.0, %v2025_v28  ;;  %v2153_v17 = vld [vmem:[#allocation6 + $0x28] sm:$0xff]  ;;  %s1534_s11 = sshll.u32 %s1761_s15, 10 }
  0x6d   : > { %3640 = vst [vmem:[#allocation14_spill] sm:$0xff] %v1977_v5  ;;  %3641 = vst [vmem:[#allocation15_spill] sm:$0xff] %v1979_v6  ;;  %v302_v1 = vmul.f32 %v2098_v53, %v2058_v40  ;;  %v2149_v12 = vrot.slane %v1983_v8, %v1989_v14  ;;  %v303_v13 = vmul.f32 %v2098_v53, %v2061_v41  ;;  %v2156_v22 = vmul.f32 0.0, %v2129_v61  ;;  %s3378_s25 = scalar_lea.hbm %s3431_s3, %s1534_s11  ;;  %s1390_s8 = scalar_lea.sflag [#allocation5], %s1957_s30 }
  0x6e   : > { %3642 = vst [vmem:[#allocation16_spill] sm:$0xff] %v1981_v7  ;;  %3643 = vst [vmem:[#allocation17_spill] sm:$0xff] %v1983_v8  ;;  %v315_v23 = vadd.f32 %v2118_v58, %v301_v63  ;;  %v2161_v24 = vrot.slane %v1983_v8, %v1973_v3  ;;  %v2165_v39 = vrot.slane %v2044_v35, %v1991_v15  ;;  %s1683_s26 = scalar_lea.vmem %s3373_s10, 1024  ;;  %s1776_s15 = smov [#allocation8]  }
  0x6f   : > { %3644 = vst [vmem:[#allocation18_spill] sm:$0xff] %v1985_v9  ;;  %3645 = vst [vmem:[#allocation19_spill] sm:$0xff] %v1987_v10  ;;  %v2172_v9 = vmul.f32 %v2021_v27, %v2042_v34  ;;  %v2176_v63 = vrot.slane %v1983_v8, %v1991_v15  ;;  %v2180_v7 = vrot.slane %v2063_v42, %v1993_v16  ;;  %p1684_p4 = scmp.ne.s32.totalorder %s3373_s10, %s1683_s26  ;;  %s1687_s21 = sshll.u32 %s1776_s15, 4  ;;  %s1688_s21 = int_to_ptr.vmem [resolvable:$false] %s1687_s21 }
  0x70   : > { %3646 = vst [vmem:[#allocation20_spill] sm:$0xff] %v1989_v14  ;;  %3647 = vst [vmem:[#allocation21_spill] sm:$0xff] %v1991_v15  ;;  %v2187_v3 = vmul.f32 %v2165_v39, %v480_v2  ;;  %s1689_s4 = scalar_lea.vmem %s1688_s21, 2048  ;;  %p1690_p12 = scmp.lt.s32.totalorder %s3373_s10, %s1688_s21 }
  0x71   : > { %3648 = vst [vmem:[#allocation22_spill] sm:$0xff] %v1993_v16  ;;  %3649 = vst [vmem:[#allocation23_spill] sm:$0xff] %v2009_v21  ;;  %p1685_p6 = pnand %p1684_p4, %p1898_p10  ;;  %p1691_p11 = scmp.lt.s32.totalorder %s1689_s4, %s1683_s26 }
  0x72   : > { %3650 = vst [vmem:[#allocation24_spill] sm:$0xff] %v2017_v26  ;;  %3651 = vst [vmem:[#allocation25_spill] sm:$0xff] %v2021_v27  ;;  %v2191_v27 = vrot.slane %v2153_v17, %v1987_v10 }
  0x73   : > { %3652 = vst [vmem:[#allocation26_spill] sm:$0xff] %v2027_v29  ;;  %3653 = vst [vmem:[#allocation27_spill] sm:$0xff] %v2042_v34  ;;  %v2197_v29 = vmul.f32 %v2180_v7, %v480_v2  ;;  %p1686_p8 = pneg %p1685_p6  ;;  %p1692_p0 = por %p1691_p11, %p1690_p12 }
  0x74   : > { %3654 = vst [vmem:[#allocation28_spill] sm:$0xff] %v2044_v35  ;;  %3655 = vst [vmem:[#allocation29_spill] sm:$0xff] %v2053_v38  ;;  %v2206_v6 = vmul.f32 %v2191_v27, %v480_v2 }
  0x75   : > { %280 = vst [vmem:[#allocation2 + $0x33] sm:$0xff] %v2042_v34  ;;  %3656 = vst [vmem:[#allocation30_spill] sm:$0xff] %v2058_v40  ;;  %p1693_p5 = pnand %p1692_p0, %p1686_p8 }
  0x76   : > { %3657 = vst [vmem:[#allocation31_spill] sm:$0xff] %v2061_v41  ;;  %3658 = vst [vmem:[#allocation32_spill] sm:$0xff] %v2063_v42 }
  0x77   : > { %3659 = vst [vmem:[#allocation33_spill] sm:$0xff] %v2065_v43  ;;  %3660 = vst [vmem:[#allocation34_spill] sm:$0xff] %v2068_v44  ;;  %v362_v44 = vmul.f32 0.0, %v2122_v59  ;;  %v317_v43 = vadd.f32 %v2118_v58, %v303_v13 }
  0x78   : > { %3661 = vst [vmem:[#allocation35_spill] sm:$0xff] %v2071_v45  ;;  %3662 = vst [vmem:[#allocation36_spill] sm:$0xff] %v2074_v46 }
  0x79   : > { %281 = vst [vmem:[#allocation2 + $0x43] sm:$0xff] %v2058_v40  ;;  %282 = vst [vmem:[#allocation2 + $0x53] sm:$0xff] %v2061_v41  ;;  %v373_v41 = vmul.f32 0.0, %v2142_v0  ;;  %v351_v42 = vadd.f32 %v341_v11, %v317_v43 }
  0x7a   : > { %3663 = vst [vmem:[#allocation37_spill] sm:$0xff] %v2083_v48  ;;  %3664 = vst [vmem:[#allocation38_spill] sm:$0xff] %v2086_v49 }
  0x7b   : > { %3665 = vst [vmem:[#allocation39_spill] sm:$0xff] %v2089_v50  ;;  %3666 = vst [vmem:[#allocation40_spill] sm:$0xff] %v2092_v51  ;;  %v482_v50 = vld [vmem:[#allocation2 + $0xd1] sm:$0xff] }
  0x7c   : > { %3667 = vst [vmem:[#allocation41_spill] sm:$0xff] %v2095_v52  ;;  %283 = vst [vmem:[#allocation2 + $0x63] sm:$0xff] %v2083_v48  ;;  %v2183_v40 = vld [vmem:[#allocation2 + $0x31] sm:$0xff] }
  0x7d   : > { %284 = vst [vmem:[#allocation2 + $0x73] sm:$0xff] %v2086_v49  ;;  %3668 = vst [vmem:[#allocation42_spill] sm:$0xff] %v2103_v54  ;;  %v326_v52 = vld [vmem:[#allocation2 + $0x30] sm:$0xff]  ;;  %v2216_v13 = vmul.f32 %v2005_v20, %v2183_v40 }
  0x7e   : > { %3669 = vst [vmem:[#allocation43_spill] sm:$0xff] %v2113_v57  ;;  %3670 = vst [vmem:[#allocation44_spill] sm:$0xff] %v2125_v60  ;;  %v481_v57 = vld [vmem:[#allocation2 + $0xc1] sm:$0xff]  ;;  %v2193_v34 = vld [vmem:[#allocation2 + $0x32] sm:$0xff] }
  0x7f   : > { %285 = vst [vmem:[#allocation2 + $0x83] sm:$0xff] %v2103_v54  ;;  %286 = vst [vmem:[#allocation2 + $0x93] sm:$0xff] %v2106_v55  ;;  %v2200_v8 = vmul.f32 %v2180_v7, %v481_v57  ;;  %v2209_v10 = vmul.f32 %v2191_v27, %v481_v57  ;;  %v2227_v57 = vrot.slane %v2153_v17, %v1993_v16 }
  0x80   : > { %287 = vst [vmem:[#allocation2 + $0xa3] sm:$0xff] %v2109_v56  ;;  %3671 = vst [vmem:[#allocation45_spill] sm:$0xff] %v2136_v62  ;;  %v304_v62 = vmul.f32 %v2098_v53, %v2083_v48  ;;  %v316_v48 = vadd.f32 %v2118_v58, %v302_v1  ;;  %v2202_v1 = vld [vmem:[#allocation2 + $0x41] sm:$0xff]  ;;  %v2223_v51 = vld [vmem:[#allocation2 + $0x51] sm:$0xff]  ;;  %v2235_v2 = vmul.f32 %v2017_v26, %v2193_v34 }
  0x81   : > { %3672 = vst [vmem:[#allocation46_spill] sm:$0xff] %v2153_v17  ;;  %3673 = vst [vmem:[#allocation47_spill] sm:$0xff] %v2156_v22  ;;  %v363_v16 = vmul.f32 %v2122_v59, %v326_v52  ;;  %v2247_v46 = vmul.f32 %v2005_v20, %v2202_v1  ;;  %v344_v22 = vmul.f32 %v2025_v28, %v326_v52 }
  0x82   : > { %3674 = vst [vmem:[#allocation48_spill] sm:$0xff] %v2161_v24  ;;  %3675 = vst [vmem:[#allocation49_spill] sm:$0xff] %v2172_v9  ;;  %v349_v9 = vadd.f32 %v341_v11, %v315_v23  ;;  %v318_v5 = vadd.f32 %v2118_v58, %v304_v62  ;;  %v2212_v23 = vmul.f32 %v2191_v27, %v482_v50  ;;  %v327_v62 = vld [vmem:[#allocation2 + $0x40] sm:$0xff] }
  0x83   : > { %3676 = vst [vmem:[#allocation50_spill] sm:$0xff] %v2180_v7  ;;  %3677 = vst [vmem:[#allocation51_spill] sm:$0xff] %v2187_v3  ;;  %v2231_v50 = vmul.f32 %v2013_v25, %v2193_v34  ;;  %v2238_v3 = vld [vmem:[#allocation2 + $0x42] sm:$0xff]  ;;  %v394_v43 = vmul.f32 %v2176_v63, %v327_v62 }
  0x84   : > { %3678 = vst [vmem:[#allocation52_spill] sm:$0xff] %v2193_v34  ;;  %3679 = vst [vmem:[#allocation53_spill] sm:$0xff] %v2197_v29  ;;  %v393_v29 = vmul.f32 %v2176_v63, %v326_v52  ;;  %v381_v38 = vadd.f32 %v373_v41, %v349_v9  ;;  %v2256_v9 = vmul.f32 %v2001_v19, %v2223_v51 }
  0x85   : > { %3680 = vst [vmem:[#allocation54_spill] sm:$0xff] %v2200_v8  ;;  %3681 = vst [vmem:[#allocation55_spill] sm:$0xff] %v2202_v1  ;;  %v2220_v8 = vmul.f32 %v2149_v12, %v2183_v40  ;;  %v2269_v15 = vmul.f32 %v2013_v25, %v2238_v3  ;;  %v2273_v35 = vmul.f32 %v2017_v26, %v2238_v3  ;;  %v2304_v26 = vld [vmem:[#allocation2 + $0x61] sm:$0xff] }
  0x86   : > { %3682 = vst [vmem:[#allocation56_spill] sm:$0xff] %v2206_v6  ;;  %3683 = vst [vmem:[#allocation57_spill] sm:$0xff] %v2209_v10  ;;  %v374_v10 = vmul.f32 %v2142_v0, %v326_v52  ;;  %v2242_v6 = vmul.f32 %v2161_v24, %v2193_v34  ;;  %v401_v41 = vadd.f32 %v393_v29, %v362_v44 }
  0x87   : > { %3684 = vst [vmem:[#allocation58_spill] sm:$0xff] %v2212_v23  ;;  %3685 = vst [vmem:[#allocation59_spill] sm:$0xff] %v2231_v50  ;;  %v350_v23 = vadd.f32 %v341_v11, %v316_v48  ;;  %v328_v50 = vld [vmem:[#allocation2 + $0x50] sm:$0xff]  ;;  %v2252_v48 = vmul.f32 %v1997_v18, %v2223_v51  ;;  %v2260_v34 = vmul.f32 %v2149_v12, %v2202_v1 }
  0x88   : > { %3686 = vst [vmem:[#allocation60_spill] sm:$0xff] %v2235_v2  ;;  %3687 = vst [vmem:[#allocation61_spill] sm:$0xff] %v2238_v3  ;;  %v375_v2 = vmul.f32 %v2142_v0, %v327_v62  ;;  %v2276_v29 = vmul.f32 %v2122_v59, %v328_v50  ;;  %v2280_v14 = vmul.f32 %v2161_v24, %v2238_v3 }
  0x89   : > { %3688 = vst [vmem:[#allocation62_spill] sm:$0xff] %v2242_v6  ;;  %3689 = vst [vmem:[#allocation63_spill] sm:$0xff] %v2252_v48  ;;  %v2264_v6 = vmul.f32 %v2009_v21, %v2238_v3  ;;  %v382_v11 = vadd.f32 %v374_v10, %v350_v23  ;;  %v433_v10 = vmul.f32 %v2129_v61, %v328_v50  ;;  %v2285_v23 = vld [vmem:[#allocation2 + $0x60] sm:$0xff]  ;;  %v2300_v3 = vld [vmem:[#allocation2 + $0x71] sm:$0xff] }
  0x8a   : > { %3690 = vst [vmem:[#allocation64_spill] sm:$0xff] %v2256_v9  ;;  %3692 = vst [vmem:[#allocation66_spill] sm:$0xff] %v2269_v15  ;;  %v2288_v15 = vmul.f32 %v2122_v59, %v327_v62  ;;  %v2290_v60 = vadd.f32 %v375_v2, %v351_v42  ;;  %v402_v52 = vadd.f32 %v394_v43, %v362_v44  ;;  %v2332_v43 = vld [vmem:[#allocation2 + $0x62] sm:$0xff] }
  0x8b   : > { %3691 = vst [vmem:[#allocation65_spill] sm:$0xff] %v2264_v6  ;;  %3693 = vst [vmem:[#allocation67_spill] sm:$0xff] %v2273_v35  ;;  %v413_v6 = vmul.f32 %v2080_v47, %v327_v62  ;;  %v2294_v35 = vmul.f32 %v2165_v39, %v2223_v51  ;;  %v395_v9 = vmul.f32 %v2176_v63, %v328_v50 }
  0x8c   : > { %3694 = vst [vmem:[#allocation68_spill] sm:$0xff] %v2280_v14  ;;  %v2298_v14 = vmul.f32 %v2180_v7, %v2223_v51  ;;  %v441_v24 = vadd.f32 %v433_v10, %v401_v41  ;;  %v414_v48 = vmul.f32 %v2080_v47, %v328_v50  ;;  %3697 = vst [vmem:[#allocation71_spill] sm:$0xff] %v2304_v26 }
  0x8d   : > { %3695 = vst [vmem:[#allocation69_spill] sm:$0xff] %v2294_v35  ;;  %v421_v45 = vadd.f32 %v413_v6, %v381_v38  ;;  %v305_v42 = vmul.f32 %v2098_v53, %v2086_v49  ;;  %v345_v2 = vmul.f32 %v2025_v28, %v327_v62  ;;  %v377_v35 = vmul.f32 %v2142_v0, %v2285_v23 }
  0x8e   : > { %3696 = vst [vmem:[#allocation70_spill] sm:$0xff] %v2298_v14  ;;  %v352_v14 = vadd.f32 %v344_v22, %v318_v5  ;;  %v495_v7 = vadd.f32 %v2030_v30, %v441_v24  ;;  %v2314_v6 = vrot.slane %v2153_v17, %v1975_v4  ;;  %v2318_v38 = vmul.f32 %v1997_v18, %v2300_v3 }
  0x8f   : > { %v376_v44 = vmul.f32 %v2142_v0, %v328_v50  ;;  %v567_v41 = vmul.f32 %v2165_v39, %v2202_v1  ;;  %v319_v62 = vadd.f32 %v2118_v58, %v305_v42  ;;  %v2326_v5 = vmul.f32 %v2001_v19, %v2300_v3  ;;  %3701 = vst [vmem:[#allocation75_spill] sm:$0xff] %v2332_v43 }
  0x90   : > { %3698 = vst [vmem:[#allocation72_spill] sm:$0xff] %v2318_v38  ;;  %v403_v30 = vadd.f32 %v395_v9, %v363_v16  ;;  %v422_v22 = vadd.f32 %v414_v48, %v382_v11  ;;  %v2330_v24 = vmul.f32 %v2165_v39, %v2304_v26  ;;  %v2335_v10 = vmul.f32 0.0, %v2314_v6  ;;  %v2342_v16 = vld [vmem:[#allocation2 + $0xb2] sm:$0xff]  ;;  %v635_v48 = vld [vmem:[#allocation2 + $0xc2] sm:$0xff] }
  0x91   : > { %3699 = vst [vmem:[#allocation73_spill] sm:$0xff] %v2326_v5  ;;  %v535_v49 = vadd.f32 %v2050_v37, %v495_v7  ;;  %v607_v42 = vmul.f32 %v2191_v27, %v2304_v26  ;;  %v353_v17 = vadd.f32 %v345_v2, %v319_v62  ;;  %v434_v4 = vmul.f32 %v2129_v61, %v2285_v23  ;;  %v2354_v7 = vld [vmem:[#allocation2 + $0x72] sm:$0xff]  ;;  %v2365_v38 = vld [vmem:[#allocation2 + $0x81] sm:$0xff] }
  0x92   : > { %3700 = vst [vmem:[#allocation74_spill] sm:$0xff] %v2330_v24  ;;  %3702 = vst [vmem:[#allocation76_spill] sm:$0xff] %v2335_v10  ;;  %v2344_v9 = vadd.f32 %v376_v44, %v352_v14  ;;  %v2348_v11 = vmul.f32 %v1997_v18, %v2304_v26  ;;  %v2352_v24 = vmul.f32 %v2001_v19, %v2304_v26  ;;  %v2362_v44 = vld [vmem:[#allocation2 + $0x70] sm:$0xff] }
  0x93   : > { %3703 = vst [vmem:[#allocation77_spill] sm:$0xff] %v2342_v16  ;;  %3706 = vst [vmem:[#allocation80_spill] sm:$0xff] %v2354_v7  ;;  %v306_v37 = vmul.f32 %v2098_v53, %v2103_v54  ;;  %v2360_v2 = vmul.f32 %v2009_v21, %v2332_v43  ;;  %v385_v62 = vadd.f32 %v377_v35, %v353_v17 }
  0x94   : > { %3704 = vst [vmem:[#allocation78_spill] sm:$0xff] %v2348_v11  ;;  %3705 = vst [vmem:[#allocation79_spill] sm:$0xff] %v2352_v24  ;;  %v442_v14 = vadd.f32 %v434_v4, %v402_v52  ;;  %v346_v5 = vmul.f32 %v2025_v28, %v328_v50  ;;  %v2369_v24 = vmul.f32 %v2013_v25, %v2332_v43 }
  0x95   : > { %3707 = vst [vmem:[#allocation81_spill] sm:$0xff] %v2360_v2  ;;  %v453_v11 = vmul.f32 %v2314_v6, %v2285_v23  ;;  %v2375_v54 = vmul.f32 %v2005_v20, %v2300_v3  ;;  %v320_v35 = vadd.f32 %v2118_v58, %v306_v37  ;;  %v575_v4 = vadd.f32 %v567_v41, %v535_v49  ;;  %v331_v2 = vld [vmem:[#allocation2 + $0x80] sm:$0xff] }
  0x96   : > { %3708 = vst [vmem:[#allocation82_spill] sm:$0xff] %v2369_v24  ;;  %v2380_v17 = vmul.f32 %v2013_v25, %v2354_v7  ;;  %v2384_v50 = vmul.f32 %v2227_v57, %v2342_v16  ;;  %v2387_v52 = vmul.f32 %v2227_v57, %v635_v48  ;;  %v378_v24 = vmul.f32 %v2142_v0, %v2362_v44  ;;  %v636_v16 = vld [vmem:[#allocation2 + $0xd2] sm:$0xff] }
  0x97   : > { %3709 = vst [vmem:[#allocation83_spill] sm:$0xff] %v2375_v54  ;;  %v461_v43 = vadd.f32 %v453_v11, %v421_v45  ;;  %v354_v21 = vadd.f32 %v346_v5, %v320_v35  ;;  %v2393_v49 = vmul.f32 %v2001_v19, %v2365_v38  ;;  %v496_v41 = vadd.f32 %v2033_v31, %v442_v14 }
  0x98   : > { %3710 = vst [vmem:[#allocation84_spill] sm:$0xff] %v2380_v17  ;;  %3711 = vst [vmem:[#allocation85_spill] sm:$0xff] %v2384_v50  ;;  %v435_v37 = vmul.f32 %v2129_v61, %v2362_v44  ;;  %v454_v50 = vmul.f32 %v2314_v6, %v2362_v44  ;;  %v307_v48 = vmul.f32 %v2098_v53, %v2106_v55 }
  0x99   : > { %3712 = vst [vmem:[#allocation86_spill] sm:$0xff] %v2387_v52  ;;  %3713 = vst [vmem:[#allocation87_spill] sm:$0xff] %v2393_v49  ;;  %v2402_v45 = vadd.f32 %v378_v24, %v354_v21  ;;  %v347_v5 = vmul.f32 %v2025_v28, %v2285_v23  ;;  %v366_v11 = vmul.f32 %v2122_v59, %v2285_v23 }
  0x9a   : > { %v2409_v35 = vmul.f32 %v2122_v59, %v331_v2  ;;  %v443_v31 = vadd.f32 %v435_v37, %v403_v30  ;;  %v462_v14 = vadd.f32 %v454_v50, %v422_v22  ;;  %v321_v52 = vadd.f32 %v2118_v58, %v307_v48  ;;  %v478_v50 = vld [vmem:[#allocation2 + $0x91] sm:$0xff] }
  0x9b   : > { %v379_v7 = vmul.f32 %v2142_v0, %v331_v2  ;;  %v396_v21 = vmul.f32 %v2176_v63, %v2285_v23  ;;  %v398_v55 = vmul.f32 %v2176_v63, %v331_v2  ;;  %v415_v24 = vmul.f32 %v2080_v47, %v2285_v23 }
  0x9c   : > { %3714 = vst [vmem:[#allocation88_spill] sm:$0xff] %v2409_v35  ;;  %v417_v17 = vmul.f32 %v2080_v47, %v331_v2  ;;  %v515_v49 = vadd.f32 %v2039_v33, %v461_v43  ;;  %v355_v54 = vadd.f32 %v347_v5, %v321_v52  ;;  %v436_v30 = vmul.f32 %v2129_v61, %v331_v2  ;;  %v2430_v33 = vld [vmem:[#allocation2 + $0x82] sm:$0xff] }
  0x9d   : > { %v455_v22 = vmul.f32 %v2314_v6, %v331_v2  ;;  %v404_v37 = vadd.f32 %v396_v21, %v2288_v15  ;;  %v406_v48 = vadd.f32 %v398_v55, %v366_v11  ;;  %v423_v10 = vadd.f32 %v415_v24, %v2290_v60  ;;  %3716 = vst [vmem:[#allocation90_spill] sm:$0xff] %v2430_v33 }
  0x9e   : > { %v425_v35 = vadd.f32 %v417_v17, %v385_v62  ;;  %v2424_v26 = vadd.f32 %v607_v42, %v575_v4  ;;  %v2427_v23 = vmul.f32 %v2227_v57, %v636_v16  ;;  %v497_v1 = vadd.f32 %v2036_v32, %v443_v31 }
  0x9f   : > { %v2432_v43 = vadd.f32 %v379_v7, %v355_v54  ;;  %v516_v2 = vadd.f32 %v2047_v36, %v462_v14  ;;  %v444_v52 = vadd.f32 %v436_v30, %v404_v37  ;;  %v463_v5 = vadd.f32 %v455_v22, %v423_v10  ;;  %v332_v7 = vld [vmem:[#allocation2 + $0x90] sm:$0xff]  ;;  %v333_v30 = vld [vmem:[#allocation2 + $0xa0] sm:$0xff]  ;;  %v3719_v37 = vld [vmem:[#allocation50_spill] sm:$0xff] }
  0xa0   : > { %3715 = vst [vmem:[#allocation89_spill] sm:$0xff] %v2427_v23  ;;  %v2436_v15 = vmul.f32 %v2005_v20, %v478_v50  ;;  %v2439_v60 = vadd.f32 %v2216_v13, %v496_v41  ;;  %v2443_v42 = vmul.f32 %v2149_v12, %v2365_v38  ;;  %v2447_v32 = vmul.f32 %v2191_v27, %v2365_v38  ;;  %v3751_v23 = vld [vmem:[#allocation36_spill] sm:$0xff] }
  0xa1   : > { %v490_v54 = vmul.f32 %v1997_v18, %v2183_v40  ;;  %v2452_v36 = vadd.f32 %v2220_v8, %v515_v49  ;;  %v2456_v10 = vmul.f32 %v2005_v20, %v2365_v38  ;;  %v2460_v13 = vmul.f32 %v2013_v25, %v2430_v33 }
  0xa2   : > { %3717 = vst [vmem:[#allocation91_spill] sm:$0xff] %v2447_v32  ;;  %v509_v16 = vmul.f32 %v2001_v19, %v2183_v40  ;;  %v2465_v62 = vadd.f32 %v2247_v46, %v497_v1  ;;  %v308_v8 = vmul.f32 %v2098_v53, %v2109_v56  ;;  %v348_v17 = vmul.f32 %v2025_v28, %v2362_v44 }
  0xa3   : > { %v498_v4 = vadd.f32 %v490_v54, %v444_v52  ;;  %v2472_v49 = vadd.f32 %v2260_v34, %v516_v2  ;;  %v367_v11 = vmul.f32 %v2122_v59, %v2362_v44  ;;  %v380_v40 = vmul.f32 %v2142_v0, %v332_v7  ;;  %v2498_v52 = vld [vmem:[#allocation2 + $0x92] sm:$0xff] }
  0xa4   : > { %3718 = vst [vmem:[#allocation92_spill] sm:$0xff] %v2465_v62  ;;  %v517_v41 = vadd.f32 %v509_v16, %v463_v5  ;;  %v530_v46 = vmul.f32 %v2005_v20, %v2223_v51  ;;  %v322_v1 = vadd.f32 %v2118_v58, %v308_v8  ;;  %v397_v53 = vmul.f32 %v2176_v63, %v2362_v44  ;;  %v2732_v62 = vld [vmem:[#allocation2 + $0x25] sm:$0xff] }
  0xa5   : > { %v399_v56 = vmul.f32 %v2176_v63, %v332_v7  ;;  %v549_v28 = vmul.f32 %v2149_v12, %v2223_v51  ;;  %v2486_v34 = vmul.f32 %v2149_v12, %v478_v50  ;;  %v570_v59 = vmul.f32 %v2165_v39, %v2300_v3  ;;  %3720 = vst [vmem:[#allocation50_spill] sm:$0xff] %v2498_v52 }
  0xa6   : > { %v418_v0 = vmul.f32 %v2080_v47, %v332_v7  ;;  %v538_v31 = vadd.f32 %v530_v46, %v498_v4  ;;  %v356_v14 = vadd.f32 %v348_v17, %v322_v1  ;;  %v405_v58 = vadd.f32 %v397_v53, %v2276_v29  ;;  %v3723_v1 = vld [vmem:[#allocation24_spill] sm:$0xff] }
  0xa7   : > { %v407_v21 = vadd.f32 %v399_v56, %v367_v11  ;;  %v557_v55 = vadd.f32 %v549_v28, %v517_v41  ;;  %v572_v24 = vmul.f32 %v2165_v39, %v478_v50  ;;  %v416_v51 = vmul.f32 %v2080_v47, %v2362_v44  ;;  %v3722_v44 = vld [vmem:[#allocation55_spill] sm:$0xff] }
  0xa8   : > { %v426_v22 = vadd.f32 %v418_v0, %v2402_v45  ;;  %v589_v2 = vmul.f32 %v3719_v37, %v2300_v3  ;;  %v388_v5 = vadd.f32 %v380_v40, %v356_v14  ;;  %v437_v54 = vmul.f32 %v2129_v61, %v332_v7  ;;  %v3725_v0 = vld [vmem:[#allocation63_spill] sm:$0xff] }
  0xa9   : > { %v438_v29 = vmul.f32 %v2129_v61, %v333_v30  ;;  %v2503_v16 = vmul.f32 %v3719_v37, %v478_v50  ;;  %v424_v4 = vadd.f32 %v416_v51, %v2344_v9  ;;  %v457_v8 = vmul.f32 %v2314_v6, %v333_v30  ;;  %v3726_v51 = vld [vmem:[#allocation71_spill] sm:$0xff] }
  0xaa   : > { %v491_v45 = vmul.f32 %v1997_v18, %v3722_v44  ;;  %v578_v17 = vadd.f32 %v570_v59, %v538_v31  ;;  %v610_v41 = vmul.f32 %v2191_v27, %v478_v50  ;;  %v445_v11 = vadd.f32 %v437_v54, %v405_v58  ;;  %v3727_v50 = vld [vmem:[#allocation48_spill] sm:$0xff]  ;;  %v479_v31 = vld [vmem:[#allocation2 + $0xa1] sm:$0xff]  ;;  %v3732_v54 = vld [vmem:[#allocation35_spill] sm:$0xff] }
  0xab   : > { %3721 = vst [vmem:[#allocation93_spill] sm:$0xff] %v2503_v16  ;;  %v446_v46 = vadd.f32 %v438_v29, %v406_v48  ;;  %v597_v40 = vadd.f32 %v589_v2, %v557_v55  ;;  %v2512_v53 = vmul.f32 %v3723_v1, %v2498_v52  ;;  %v456_v61 = vmul.f32 %v2314_v6, %v332_v7  ;;  %v3729_v58 = vld [vmem:[#allocation64_spill] sm:$0xff] }
  0xac   : > { %v465_v56 = vadd.f32 %v457_v8, %v425_v35  ;;  %v400_v9 = vmul.f32 %v2176_v63, %v333_v30  ;;  %v499_v28 = vadd.f32 %v491_v45, %v445_v11  ;;  %v531_v18 = vmul.f32 %v2005_v20, %v3726_v51  ;;  %v2531_v20 = vld [vmem:[#allocation2 + $0x52] sm:$0xff] }
  0xad   : > { %3724 = vst [vmem:[#allocation55_spill] sm:$0xff] %v2512_v53  ;;  %v500_v14 = vadd.f32 %v3725_v0, %v446_v46  ;;  %v2521_v59 = vmul.f32 %v3727_v50, %v2498_v52  ;;  %v464_v48 = vadd.f32 %v456_v61, %v424_v4  ;;  %v551_v6 = vmul.f32 %v2149_v12, %v2300_v3 }
  0xae   : > { %v519_v55 = vadd.f32 %v3729_v58, %v465_v56  ;;  %v2526_v35 = vadd.f32 %v610_v41, %v578_v17  ;;  %v419_v63 = vmul.f32 %v2080_v47, %v333_v30  ;;  %v539_v7 = vadd.f32 %v531_v18, %v499_v28  ;;  %3731 = vst [vmem:[#allocation64_spill] sm:$0xff] %v2531_v20  ;;  %v3735_v41 = vld [vmem:[#allocation88_spill] sm:$0xff]  ;;  %v3737_v28 = vld [vmem:[#allocation47_spill] sm:$0xff] }
  0xaf   : > { %3728 = vst [vmem:[#allocation63_spill] sm:$0xff] %v2521_v59  ;;  %v571_v2 = vmul.f32 %v2165_v39, %v2365_v38  ;;  %v2534_v29 = vadd.f32 %v3732_v54, %v597_v40  ;;  %v510_v4 = vmul.f32 %v2001_v19, %v3722_v44  ;;  %v550_v8 = vmul.f32 %v2149_v12, %v3726_v51  ;;  %v3736_v40 = vld [vmem:[#allocation44_spill] sm:$0xff] }
  0xb0   : > { %3730 = vst [vmem:[#allocation71_spill] sm:$0xff] %v2526_v35  ;;  %v2540_v45 = vadd.f32 %v551_v6, %v519_v55  ;;  %v554_v17 = vmul.f32 %v2149_v12, %v479_v31  ;;  %v611_v30 = vmul.f32 %v2191_v27, %v479_v31  ;;  %v408_v11 = vadd.f32 %v400_v9, %v3735_v41  ;;  %v3738_v58 = vld [vmem:[#allocation76_spill] sm:$0xff]  ;;  %v2684_v35 = vld [vmem:[#allocation2 + $0x44] sm:$0xff] }
  0xb1   : > { %3733 = vst [vmem:[#allocation35_spill] sm:$0xff] %v2534_v29  ;;  %v579_v47 = vadd.f32 %v571_v2, %v539_v7  ;;  %v518_v46 = vadd.f32 %v510_v4, %v464_v48  ;;  %v427_v61 = vadd.f32 %v419_v63, %v2432_v43  ;;  %v428_v56 = vadd.f32 %v3736_v40, %v388_v5  ;;  %v3740_v48 = vld [vmem:[#allocation20_spill] sm:$0xff]  ;;  %v3742_v5 = vld [vmem:[#allocation83_spill] sm:$0xff] }
  0xb2   : > { %3734 = vst [vmem:[#allocation94_spill] sm:$0xff] %v2540_v45  ;;  %v447_v0 = vadd.f32 %v3737_v28, %v407_v21  ;;  %v573_v19 = vmul.f32 %v2165_v39, %v479_v31  ;;  %v665_v18 = vmul.f32 %v2013_v25, %v2531_v20  ;;  %v466_v12 = vadd.f32 %v3738_v58, %v426_v22  ;;  %v3741_v43 = vld [vmem:[#allocation28_spill] sm:$0xff]  ;;  %v3744_v39 = vld [vmem:[#allocation21_spill] sm:$0xff]  ;;  %v3747_v4 = vld [vmem:[#allocation79_spill] sm:$0xff] }
  0xb3   : > { %v619_v44 = vadd.f32 %v611_v30, %v579_v47  ;;  %v590_v55 = vmul.f32 %v3719_v37, %v2365_v38  ;;  %v2555_v9 = vmul.f32 %v3719_v37, %v479_v31  ;;  %v2559_v6 = vrot.slane %v3741_v43, %v3740_v48  ;;  %v3745_v7 = vld [vmem:[#allocation32_spill] sm:$0xff]  ;;  %v3746_v31 = vld [vmem:[#allocation78_spill] sm:$0xff] }
  0xb4   : > { %v540_v21 = vadd.f32 %v3742_v5, %v500_v14  ;;  %v2566_v2 = vrot.slane %v3745_v7, %v3744_v39  ;;  %v448_v25 = vadd.f32 %v3737_v28, %v408_v11  ;;  %v467_v22 = vadd.f32 %v3738_v58, %v427_v61  ;;  %v3748_v41 = vld [vmem:[#allocation72_spill] sm:$0xff]  ;;  %v3749_v14 = vld [vmem:[#allocation73_spill] sm:$0xff]  ;;  %v3752_v11 = vld [vmem:[#allocation87_spill] sm:$0xff] }
  0xb5   : > { %3739 = vst [vmem:[#allocation88_spill] sm:$0xff] %v2555_v9  ;;  %v2562_v63 = vadd.f32 %v665_v18, %v619_v44  ;;  %v468_v38 = vadd.f32 %v3738_v58, %v428_v56  ;;  %v501_v54 = vadd.f32 %v3746_v31, %v447_v0  ;;  %v520_v47 = vadd.f32 %v3747_v4, %v466_v12  ;;  %v3750_v18 = vld [vmem:[#allocation70_spill] sm:$0xff]  ;;  %v3754_v0 = vld [vmem:[#allocation56_spill] sm:$0xff] }
  0xb6   : > { %v580_v30 = vadd.f32 %v572_v24, %v540_v21  ;;  %v502_v40 = vadd.f32 %v3748_v41, %v448_v25  ;;  %v521_v44 = vadd.f32 %v3749_v14, %v467_v22  ;;  %v595_v5 = vadd.f32 %v3750_v18, %v2452_v36  ;;  %v3755_v21 = vld [vmem:[#allocation29_spill] sm:$0xff]  ;;  %v3756_v36 = vld [vmem:[#allocation62_spill] sm:$0xff]  ;;  %v3761_v4 = vld [vmem:[#allocation40_spill] sm:$0xff] }
  0xb7   : > { %3743 = vst [vmem:[#allocation44_spill] sm:$0xff] %v2562_v63  ;;  %v669_v53 = vadd.f32 %v3751_v23, %v2424_v26  ;;  %v522_v28 = vadd.f32 %v3752_v11, %v468_v38  ;;  %v541_v61 = vadd.f32 %v2456_v10, %v501_v54  ;;  %v2582_v56 = vadd.f32 %v2443_v42, %v520_v47  ;;  %v3758_v38 = vld [vmem:[#allocation82_spill] sm:$0xff]  ;;  %v3760_v42 = vld [vmem:[#allocation51_spill] sm:$0xff]  ;;  %v3763_v41 = vld [vmem:[#allocation52_spill] sm:$0xff] }
  0xb8   : > { %v620_v58 = vadd.f32 %v3754_v0, %v580_v30  ;;  %v542_v24 = vadd.f32 %v2436_v15, %v502_v40  ;;  %v2587_v12 = vadd.f32 %v2486_v34, %v521_v44  ;;  %v649_v25 = vadd.f32 %v3755_v21, %v595_v5  ;;  %v3762_v30 = vld [vmem:[#allocation61_spill] sm:$0xff]  ;;  %v3764_v40 = vld [vmem:[#allocation23_spill] sm:$0xff]  ;;  %v3768_v44 = vld [vmem:[#allocation14_spill] sm:$0xff]  ;;  %3800 = vst [vmem:[#allocation51_spill] sm:$0xff] %v2684_v35 }
  0xb9   : > { %3753 = vst [vmem:[#allocation47_spill] sm:$0xff] %v2582_v56  ;;  %v709_v22 = vadd.f32 %v3756_v36, %v669_v53  ;;  %v558_v31 = vadd.f32 %v550_v8, %v518_v46  ;;  %v2591_v26 = vadd.f32 %v554_v17, %v522_v28  ;;  %v581_v23 = vadd.f32 %v573_v19, %v541_v61  ;;  %v3765_v8 = vld [vmem:[#allocation57_spill] sm:$0xff]  ;;  %v3767_v19 = vld [vmem:[#allocation15_spill] sm:$0xff]  ;;  %v3771_v11 = vld [vmem:[#allocation58_spill] sm:$0xff] }
  0xba   : > { %v2594_v10 = vadd.f32 %v3758_v38, %v620_v58  ;;  %v582_v54 = vadd.f32 %v3760_v42, %v542_v24  ;;  %v689_v47 = vadd.f32 %v3761_v4, %v649_v25  ;;  %v721_v15 = vmul.f32 %v2559_v6, %v3762_v30  ;;  %v3766_v46 = vld [vmem:[#allocation13_spill] sm:$0xff]  ;;  %v3772_v58 = vld [vmem:[#allocation75_spill] sm:$0xff]  ;;  %v3773_v21 = vld [vmem:[#allocation84_spill] sm:$0xff] }
  0xbb   : > { %3757 = vst [vmem:[#allocation76_spill] sm:$0xff] %v2591_v26  ;;  %v741_v34 = vmul.f32 %v2566_v2, %v2531_v20  ;;  %v644_v53 = vmul.f32 %v3764_v40, %v3763_v41  ;;  %v621_v17 = vadd.f32 %v3765_v8, %v581_v23  ;;  %v2607_v14 = vrot.slane %v3767_v19, %v3766_v46  ;;  %v3769_v18 = vld [vmem:[#allocation17_spill] sm:$0xff]  ;;  %v3775_v36 = vld [vmem:[#allocation26_spill] sm:$0xff]  ;;  %v3777_v4 = vld [vmem:[#allocation12_spill] sm:$0xff] }
  0xbc   : > { %3759 = vst [vmem:[#allocation20_spill] sm:$0xff] %v2594_v10  ;;  %v2611_v5 = vrot.slane %v3769_v18, %v3768_v44  ;;  %v622_v28 = vadd.f32 %v3771_v11, %v582_v54  ;;  %v729_v61 = vadd.f32 %v721_v15, %v689_v47  ;;  %v761_v24 = vmul.f32 %v2227_v57, %v3772_v58  ;;  %v3776_v38 = vld [vmem:[#allocation33_spill] sm:$0xff]  ;;  %v3792_v40 = vld [vmem:[#allocation19_spill] sm:$0xff] }
  0xbd   : > { %v749_v0 = vadd.f32 %v741_v34, %v709_v22  ;;  %v2617_v25 = vadd.f32 %v3773_v21, %v621_v17  ;;  %v815_v23 = vmul.f32 %v2607_v14, %v3775_v36  ;;  %v2625_v30 = vrot.slane %v3741_v43, %v3777_v4  ;;  %v3780_v47 = vld [vmem:[#allocation41_spill] sm:$0xff]  ;;  %v3782_v17 = vld [vmem:[#allocation30_spill] sm:$0xff]  ;;  %v2669_v56 = vld [vmem:[#allocation2 + $0x34] sm:$0xff] }
  0xbe   : > { %3770 = vst [vmem:[#allocation28_spill] sm:$0xff] %v2611_v5  ;;  %v835_v42 = vmul.f32 %v2611_v5, %v3776_v38  ;;  %v2628_v54 = vadd.f32 %v2460_v13, %v622_v28  ;;  %v769_v22 = vadd.f32 %v761_v24, %v729_v61  ;;  %v2633_v34 = vrot.slane %v3745_v7, %v3740_v48  ;;  %v3783_v21 = vld [vmem:[#allocation46_spill] sm:$0xff]  ;;  %v3786_v24 = vld [vmem:[#allocation31_spill] sm:$0xff]  ;;  %v3790_v26 = vld [vmem:[#allocation37_spill] sm:$0xff] }
  0xbf   : > { %3774 = vst [vmem:[#allocation83_spill] sm:$0xff] %v2617_v25  ;;  %3778 = vst [vmem:[#allocation21_spill] sm:$0xff] %v2625_v30  ;;  %v803_v15 = vadd.f32 %v3780_v47, %v749_v0  ;;  %v598_v41 = vadd.f32 %v590_v55, %v558_v31  ;;  %v684_v8 = vmul.f32 %v3723_v1, %v2531_v20  ;;  %v911_v13 = vld [vmem:[#allocation2 + $0x4] sm:$0xff]  ;;  %v3788_v55 = vld [vmem:[#allocation16_spill] sm:$0xff] }
  0xc0   : > { %3779 = vst [vmem:[#allocation32_spill] sm:$0xff] %v2628_v54  ;;  %3781 = vst [vmem:[#allocation78_spill] sm:$0xff] %v2633_v34  ;;  %v855_v11 = vmul.f32 %v2625_v30, %v3782_v17  ;;  %v2641_v36 = vrot.slane %v3783_v21, %v3744_v39  ;;  %v2643_v28 = vld [vmem:[#allocation2 + $0xa2] sm:$0xff]  ;;  %v823_v61 = vadd.f32 %v815_v23, %v769_v22  ;;  %v2653_v25 = vld [vmem:[#allocation2 + $0x14] sm:$0xff] }
  0xc1   : > { %3785 = vst [vmem:[#allocation72_spill] sm:$0xff] %v2643_v28  ;;  %v843_v0 = vadd.f32 %v835_v42, %v803_v15  ;;  %v875_v47 = vmul.f32 %v2633_v34, %v3786_v24  ;;  %v3787_v54 = vld [vmem:[#allocation22_spill] sm:$0xff]  ;;  %v2659_v9 = vrot.slane %v3767_v19, %v3792_v40  ;;  %v2663_v23 = vrot.slane %v3769_v18, %v3766_v46 }
  0xc2   : > { %3784 = vst [vmem:[#allocation79_spill] sm:$0xff] %v2641_v36  ;;  %v2649_v31 = vrot.slane %v3788_v55, %v3787_v54  ;;  %v895_v59 = vmul.f32 %v2641_v36, %v3790_v26  ;;  %v2655_v10 = vld [vmem:[#allocation2 + $0x24] sm:$0xff]  ;;  %v2667_v42 = vrot.slane %v3741_v43, %v3768_v44  ;;  %v863_v22 = vadd.f32 %v855_v11, %v823_v61 }
  0xc3   : > { %3791 = vst [vmem:[#allocation70_spill] sm:$0xff] %v2655_v10  ;;  %3793 = vst [vmem:[#allocation36_spill] sm:$0xff] %v2659_v9  ;;  %v883_v15 = vadd.f32 %v875_v47, %v843_v0  ;;  %v3796_v1 = vld [vmem:[#allocation18_spill] sm:$0xff]  ;;  %v2678_v45 = vmul.f32 %v3727_v50, %v2643_v28  ;;  %v2682_v52 = vmul.f32 %v2559_v6, %v2643_v28  ;;  %v2696_v47 = vld [vmem:[#allocation2 + $0x54] sm:$0xff] }
  0xc4   : > { %3789 = vst [vmem:[#allocation73_spill] sm:$0xff] %v2649_v31  ;;  %3794 = vst [vmem:[#allocation87_spill] sm:$0xff] %v2663_v23  ;;  %v929_v63 = vmul.f32 %v2649_v31, %v911_v13  ;;  %v2674_v16 = vrot.slane %v3745_v7, %v3796_v1  ;;  %v2688_v11 = vrot.slane %v3745_v7, %v3777_v4  ;;  %v2694_v61 = vld [vmem:[#allocation2 + $0x64] sm:$0xff] }
  0xc5   : > { %3795 = vst [vmem:[#allocation56_spill] sm:$0xff] %v2667_v42  ;;  %3798 = vst [vmem:[#allocation62_spill] sm:$0xff] %v2678_v45  ;;  %v2692_v13 = vrot.slane %v3783_v21, %v3740_v48  ;;  %v903_v0 = vadd.f32 %v895_v59, %v863_v22  ;;  %v949_v17 = vmul.f32 %v2659_v9, %v2653_v25 }
  0xc6   : > { %3797 = vst [vmem:[#allocation29_spill] sm:$0xff] %v2674_v16  ;;  %3799 = vst [vmem:[#allocation82_spill] sm:$0xff] %v2682_v52  ;;  %v937_v45 = vadd.f32 %v929_v63, %v883_v15  ;;  %v969_v52 = vmul.f32 %v2663_v23, %v2655_v10  ;;  %v652_v50 = vadd.f32 %v644_v53, %v598_v41 }
  0xc7   : > { %3801 = vst [vmem:[#allocation40_spill] sm:$0xff] %v2688_v11  ;;  %3802 = vst [vmem:[#allocation61_spill] sm:$0xff] %v2692_v13  ;;  %v2704_v33 = vmul.f32 %v2566_v2, %v2643_v28  ;;  %v989_v32 = vmul.f32 %v2667_v42, %v2669_v56  ;;  %v2710_v59 = vrot.slane %v3788_v55, %v3744_v39  ;;  %v2722_v28 = vld [vmem:[#allocation2 + $0x15] sm:$0xff]  ;;  %v3815_v42 = vld [vmem:[#allocation77_spill] sm:$0xff] }
  0xc8   : > { %3803 = vst [vmem:[#allocation52_spill] sm:$0xff] %v2694_v61  ;;  %3804 = vst [vmem:[#allocation57_spill] sm:$0xff] %v2696_v47  ;;  %v957_v22 = vadd.f32 %v949_v17, %v903_v0  ;;  %v977_v63 = vadd.f32 %v969_v52, %v937_v45  ;;  %v1009_v15 = vmul.f32 %v2674_v16, %v2684_v35  ;;  %v2734_v16 = vld [vmem:[#allocation2 + $0x35] sm:$0xff]  ;;  %v2758_v35 = vld [vmem:[#allocation2 + $0x65] sm:$0xff] }
  0xc9   : > { %3805 = vst [vmem:[#allocation13_spill] sm:$0xff] %v2704_v33  ;;  %3806 = vst [vmem:[#allocation15_spill] sm:$0xff] %v2710_v59  ;;  %v2716_v29 = vrot.slane %v3767_v19, %v3787_v54  ;;  %v1029_v53 = vmul.f32 %v2688_v11, %v2696_v47  ;;  %v1049_v41 = vmul.f32 %v2692_v13, %v2694_v61  ;;  %v1065_v33 = vld [vmem:[#allocation2 + $0x5] sm:$0xff] }
  0xca   : > { %v2726_v17 = vrot.slane %v3741_v43, %v3766_v46  ;;  %v2730_v52 = vrot.slane %v3745_v7, %v3768_v44  ;;  %v997_v45 = vadd.f32 %v989_v32, %v957_v22  ;;  %v1017_v0 = vadd.f32 %v1009_v15, %v977_v63  ;;  %3810 = vst [vmem:[#allocation75_spill] sm:$0xff] %v2734_v16  ;;  %v2736_v11 = vld [vmem:[#allocation2 + $0x45] sm:$0xff]  ;;  %v2756_v15 = vld [vmem:[#allocation2 + $0x55] sm:$0xff] }
  0xcb   : > { %3807 = vst [vmem:[#allocation14_spill] sm:$0xff] %v2716_v29  ;;  %3811 = vst [vmem:[#allocation84_spill] sm:$0xff] %v2736_v11  ;;  %v2740_v13 = vrot.slane %v3783_v21, %v3796_v1  ;;  %v2744_v61 = vrot.slane %v3783_v21, %v3777_v4  ;;  %v2746_v47 = vadd.f32 %v684_v8, %v652_v50  ;;  %v3817_v22 = vld [vmem:[#allocation53_spill] sm:$0xff] }
  0xcc   : > { %3808 = vst [vmem:[#allocation17_spill] sm:$0xff] %v2726_v17  ;;  %3809 = vst [vmem:[#allocation58_spill] sm:$0xff] %v2730_v52  ;;  %v2750_v32 = vmul.f32 %v2559_v6, %v3815_v42  ;;  %v2754_v63 = vadd.f32 %v3817_v22, %v2587_v12  ;;  %v2762_v1 = vrot.slane %v3769_v18, %v3792_v40 }
  0xcd   : > { %3812 = vst [vmem:[#allocation26_spill] sm:$0xff] %v2740_v13  ;;  %3813 = vst [vmem:[#allocation33_spill] sm:$0xff] %v2744_v61  ;;  %v1037_v4 = vadd.f32 %v1029_v53, %v997_v45  ;;  %v1057_v23 = vadd.f32 %v1049_v41, %v1017_v0  ;;  %v1083_v50 = vmul.f32 %v2710_v59, %v1065_v33  ;;  %v1219_v0 = vld [vmem:[#allocation2 + $0x6] sm:$0xff] }
  0xce   : > { %3814 = vst [vmem:[#allocation12_spill] sm:$0xff] %v2746_v47  ;;  %3816 = vst [vmem:[#allocation41_spill] sm:$0xff] %v2750_v32  ;;  %v1103_v8 = vmul.f32 %v2716_v29, %v2722_v28  ;;  %v1123_v42 = vmul.f32 %v2762_v1, %v2732_v62  ;;  %v1143_v12 = vmul.f32 %v2726_v17, %v2734_v16  ;;  %v2783_v47 = vld [vmem:[#allocation6 + $0x30] ss:$0 sm:$0xff]  ;;  %v2785_v17 = vld [vmem:[#allocation2 + $0x26] sm:$0xff] }
  0xcf   : > { %3818 = vst [vmem:[#allocation46_spill] sm:$0xff] %v2754_v63  ;;  %3819 = vst [vmem:[#allocation31_spill] sm:$0xff] %v2758_v35  ;;  %v1163_v22 = vmul.f32 %v2730_v52, %v2736_v11  ;;  %v2775_v32 = vrot.slane %v3788_v55, %v3740_v48  ;;  %v1091_v53 = vadd.f32 %v1083_v50, %v1037_v4  ;;  %v2781_v63 = vld [vmem:[#allocation2 + $0x16] sm:$0xff] }
  0xd0   : > { %3820 = vst [vmem:[#allocation22_spill] sm:$0xff] %v2762_v1  ;;  %v1111_v41 = vadd.f32 %v1103_v8, %v1057_v23  ;;  %v1183_v33 = vmul.f32 %v2740_v13, %v2756_v15  ;;  %v1203_v45 = vmul.f32 %v2744_v61, %v2758_v35  ;;  %3822 = vst [vmem:[#allocation37_spill] sm:$0xff] %v2783_v47  ;;  %v3827_v23 = vld [vmem:[#allocation69_spill] sm:$0xff]  ;;  %v2801_v61 = vld [vmem:[#allocation2 + $0x36] sm:$0xff] }
  0xd1   : > { %3821 = vst [vmem:[#allocation16_spill] sm:$0xff] %v2775_v32  ;;  %3823 = vst [vmem:[#allocation19_spill] sm:$0xff] %v2785_v17  ;;  %v2789_v52 = vrot.slane %v3767_v19, %v3744_v39  ;;  %v2793_v48 = vrot.slane %v3741_v43, %v3792_v40  ;;  %v2797_v55 = vrot.slane %v3745_v7, %v3766_v46  ;;  %v2803_v13 = vld [vmem:[#allocation2 + $0x46] sm:$0xff] }
  0xd2   : > { %v576_v4 = vadd.f32 %v3827_v23, %v2439_v60  ;;  %v1131_v50 = vadd.f32 %v1123_v42, %v1091_v53  ;;  %v1151_v8 = vadd.f32 %v1143_v12, %v1111_v41  ;;  %3828 = vst [vmem:[#allocation69_spill] sm:$0xff] %v2801_v61  ;;  %3829 = vst [vmem:[#allocation95_spill] sm:$0xff] %v2803_v13  ;;  %v2805_v35 = vld [vmem:[#allocation2 + $0x66] sm:$0xff]  ;;  %v2822_v12 = vld [vmem:[#allocation2 + $0x56] sm:$0xff] }
  0xd3   : > { %3824 = vst [vmem:[#allocation18_spill] sm:$0xff] %v2789_v52  ;;  %3825 = vst [vmem:[#allocation77_spill] sm:$0xff] %v2793_v48  ;;  %v588_v39 = vmul.f32 %v3719_v37, %v3726_v51  ;;  %v608_v43 = vmul.f32 %v2191_v27, %v2300_v3  ;;  %v1237_v7 = vmul.f32 %v2775_v32, %v1219_v0  ;;  %v3835_v41 = vld [vmem:[#allocation39_spill] sm:$0xff] }
  0xd4   : > { %3826 = vst [vmem:[#allocation53_spill] sm:$0xff] %v2797_v55  ;;  %3830 = vst [vmem:[#allocation96_spill] sm:$0xff] %v2805_v35  ;;  %v1257_v40 = vmul.f32 %v2789_v52, %v2781_v63  ;;  %v2816_v60 = vrot.slane %v3769_v18, %v3787_v54  ;;  %v2820_v46 = vrot.slane %v3783_v21, %v3768_v44 }
  0xd5   : > { %v1171_v19 = vadd.f32 %v1163_v22, %v1131_v50  ;;  %v1191_v42 = vadd.f32 %v1183_v33, %v1151_v8  ;;  %3833 = vst [vmem:[#allocation99_spill] sm:$0xff] %v2822_v12  ;;  %v596_v37 = vadd.f32 %v588_v39, %v2472_v49  ;;  %v616_v3 = vadd.f32 %v608_v43, %v576_v4  ;;  %v3834_v22 = vld [vmem:[#allocation34_spill] sm:$0xff]  ;;  %v3836_v4 = vld [vmem:[#allocation80_spill] sm:$0xff] }
  0xd6   : > { %3831 = vst [vmem:[#allocation97_spill] sm:$0xff] %v2816_v60  ;;  %3832 = vst [vmem:[#allocation98_spill] sm:$0xff] %v2820_v46  ;;  %v1277_v27 = vmul.f32 %v2816_v60, %v2785_v17  ;;  %v1297_v51 = vmul.f32 %v2793_v48, %v2801_v61  ;;  %v1317_v18 = vmul.f32 %v2797_v55, %v2803_v13 }
  0xd7   : > { %v1357_v44 = vmul.f32 %v2783_v47, %v2805_v35  ;;  %v1211_v54 = vadd.f32 %v1203_v45, %v1171_v19  ;;  %v1245_v21 = vadd.f32 %v1237_v7, %v1191_v42  ;;  %v650_v53 = vadd.f32 %v3834_v22, %v596_v37  ;;  %v3837_v45 = vld [vmem:[#allocation60_spill] sm:$0xff]  ;;  %v3839_v37 = vld [vmem:[#allocation27_spill] sm:$0xff] }
  0xd8   : > { %v670_v33 = vadd.f32 %v3835_v41, %v616_v3  ;;  %v1337_v49 = vmul.f32 %v2820_v46, %v2822_v12  ;;  %v722_v0 = vmul.f32 %v2559_v6, %v2531_v20  ;;  %v742_v23 = vmul.f32 %v2566_v2, %v3772_v58  ;;  %v3838_v7 = vld [vmem:[#allocation68_spill] sm:$0xff] }
  0xd9   : > { %v762_v50 = vmul.f32 %v2227_v57, %v3836_v4  ;;  %v1265_v8 = vadd.f32 %v1257_v40, %v1211_v54  ;;  %v1285_v39 = vadd.f32 %v1277_v27, %v1245_v21  ;;  %v690_v43 = vadd.f32 %v3837_v45, %v650_v53  ;;  %v2853_v47 = vld [vmem:[#allocation2 + $0x74] sm:$0xff]  ;;  %v3840_v53 = vld [vmem:[#allocation38_spill] sm:$0xff] }
  0xda   : > { %v710_v19 = vadd.f32 %v3838_v7, %v670_v33  ;;  %v816_v42 = vmul.f32 %v2607_v14, %v3776_v38  ;;  %v836_v3 = vmul.f32 %v2611_v5, %v3839_v37  ;;  %v856_v22 = vmul.f32 %v2625_v30, %v3786_v24  ;;  %v3841_v24 = vld [vmem:[#allocation87_spill] sm:$0xff] }
  0xdb   : > { %v876_v41 = vmul.f32 %v2633_v34, %v3790_v26  ;;  %v1305_v40 = vadd.f32 %v1297_v51, %v1265_v8  ;;  %v1325_v27 = vadd.f32 %v1317_v18, %v1285_v39  ;;  %v730_v54 = vadd.f32 %v722_v0, %v690_v43  ;;  %v3842_v51 = vld [vmem:[#allocation43_spill] sm:$0xff]  ;;  %v3845_v39 = vld [vmem:[#allocation57_spill] sm:$0xff] }
  0xdc   : > { %v750_v21 = vadd.f32 %v742_v23, %v710_v19  ;;  %v896_v33 = vmul.f32 %v2641_v36, %v3840_v53  ;;  %v930_v38 = vmul.f32 %v2649_v31, %v2653_v25  ;;  %v950_v45 = vmul.f32 %v2659_v9, %v2655_v10  ;;  %v3843_v0 = vld [vmem:[#allocation51_spill] sm:$0xff]  ;;  %v3844_v23 = vld [vmem:[#allocation56_spill] sm:$0xff]  ;;  %v3846_v43 = vld [vmem:[#allocation29_spill] sm:$0xff] }
  0xdd   : > { %v970_v7 = vmul.f32 %v3841_v24, %v2669_v56  ;;  %v1345_v5 = vadd.f32 %v1337_v49, %v1305_v40  ;;  %v1365_v34 = vadd.f32 %v1357_v44, %v1325_v27  ;;  %v770_v46 = vadd.f32 %v762_v50, %v730_v54  ;;  %v3847_v53 = vld [vmem:[#allocation52_spill] sm:$0xff]  ;;  %v3849_v9 = vld [vmem:[#allocation61_spill] sm:$0xff] }
  0xde   : > { %v804_v18 = vadd.f32 %v3842_v51, %v750_v21  ;;  %v990_v8 = vmul.f32 %v3844_v23, %v3843_v0  ;;  %v1010_v19 = vmul.f32 %v3846_v43, %v3845_v39  ;;  %v3848_v25 = vld [vmem:[#allocation40_spill] sm:$0xff]  ;;  %v1050_v10 = vmul.f32 %v3849_v9, %v2853_v47  ;;  %v3851_v54 = vld [vmem:[#allocation17_spill] sm:$0xff]  ;;  %v3852_v51 = vld [vmem:[#allocation58_spill] sm:$0xff] }
  0xdf   : > { %v1030_v31 = vmul.f32 %v3848_v25, %v3847_v53  ;;  %v1373_v36 = vadd.f32 %v1365_v34, %v1345_v5  ;;  %v824_v24 = vadd.f32 %v816_v42, %v770_v46  ;;  %v2872_v44 = vld [vmem:[#allocation2 + $0x75] sm:$0xff]  ;;  %v1084_v50 = vmul.f32 %v2710_v59, %v2722_v28  ;;  %v3854_v46 = vld [vmem:[#allocation74_spill] sm:$0xff] }
  0xe0   : > { %v844_v49 = vadd.f32 %v836_v3, %v804_v18  ;;  %3850 = vst [vmem:[#allocation34_spill] sm:$0xff] %v2872_v44  ;;  %v1104_v40 = vmul.f32 %v2716_v29, %v2732_v62  ;;  %v1124_v27 = vmul.f32 %v2762_v1, %v2734_v16  ;;  %v1144_v21 = vmul.f32 %v3851_v54, %v2736_v11  ;;  %v3853_v28 = vld [vmem:[#allocation92_spill] sm:$0xff]  ;;  %v3855_v3 = vld [vmem:[#allocation35_spill] sm:$0xff]  ;;  %v3858_v16 = vld [vmem:[#allocation26_spill] sm:$0xff] }
  0xe1   : > { %v1164_v9 = vmul.f32 %v3852_v51, %v2756_v15  ;;  %1381 = vst [vmem:[%s2886_s24] sm:$0xff] %v1373_v36  ;;  %v864_v5 = vadd.f32 %v856_v22, %v824_v24  ;;  %v577_v42 = vadd.f32 %v3854_v46, %v3853_v28  ;;  %v3856_v18 = vld [vmem:[#allocation67_spill] sm:$0xff]  ;;  %v3859_v54 = vld [vmem:[#allocation33_spill] sm:$0xff]  ;;  %v1238_v51 = vmul.f32 %v2775_v32, %v2781_v63 }
  0xe2   : > { %v884_v34 = vadd.f32 %v876_v41, %v844_v49  ;;  %v691_v29 = vadd.f32 %v3856_v18, %v3855_v3  ;;  %v3857_v1 = vld [vmem:[#allocation31_spill] sm:$0xff]  ;;  %v1204_v11 = vmul.f32 %v3859_v54, %v2872_v44  ;;  %v723_v36 = vmul.f32 %v2559_v6, %v3772_v58  ;;  %v3861_v18 = vld [vmem:[#allocation90_spill] sm:$0xff] }
  0xe3   : > { %v1184_v59 = vmul.f32 %v3858_v16, %v3857_v1  ;;  %v904_v22 = vadd.f32 %v896_v33, %v864_v5  ;;  %v2903_v24 = vmul.f32 %v2789_v52, %v2785_v17  ;;  %v3860_v49 = vld [vmem:[#allocation91_spill] sm:$0xff]  ;;  %v2908_v46 = vmul.f32 %v2816_v60, %v2801_v61  ;;  %v3864_v17 = vld [vmem:[#allocation48_spill] sm:$0xff]  ;;  %v3875_v61 = vld [vmem:[#allocation73_spill] sm:$0xff] }
  0xe4   : > { %v938_v41 = vadd.f32 %v930_v38, %v884_v34  ;;  %v617_v28 = vadd.f32 %v3860_v49, %v577_v42  ;;  %v731_v3 = vadd.f32 %v723_v36, %v691_v29  ;;  %v763_v16 = vmul.f32 %v2227_v57, %v3861_v18  ;;  %v2914_v38 = vld [vmem:[#allocation2 + $0x76] sm:$0xff] }
  0xe5   : > { %v817_v63 = vmul.f32 %v2607_v14, %v3839_v37  ;;  %v958_v32 = vadd.f32 %v950_v45, %v904_v22  ;;  %3862 = vst [vmem:[#allocation39_spill] sm:$0xff] %v2914_v38  ;;  %v3863_v5 = vld [vmem:[#allocation59_spill] sm:$0xff]  ;;  %v703_v42 = vmul.f32 %v3864_v17, %v2531_v20  ;;  %v2921_v49 = vmul.f32 %v2793_v48, %v2803_v13  ;;  %v3866_v20 = vld [vmem:[#allocation37_spill] sm:$0xff]  ;;  %v3872_v13 = vld [vmem:[#allocation78_spill] sm:$0xff] }
  0xe6   : > { %v978_v33 = vadd.f32 %v970_v7, %v938_v41  ;;  %v671_v34 = vadd.f32 %v3863_v5, %v617_v28  ;;  %v2925_v29 = vmul.f32 %v2797_v55, %v2822_v12  ;;  %v771_v36 = vadd.f32 %v763_v16, %v731_v3  ;;  %v3865_v28 = vld [vmem:[#allocation98_spill] sm:$0xff]  ;;  %v3868_v16 = vld [vmem:[#allocation79_spill] sm:$0xff] }
  0xe7   : > { %v857_v37 = vmul.f32 %v2625_v30, %v3790_v26  ;;  %v998_v45 = vadd.f32 %v990_v8, %v958_v32  ;;  %v743_v41 = vmul.f32 %v2566_v2, %v3836_v4  ;;  %v2933_v5 = vmul.f32 %v3865_v28, %v2805_v35  ;;  %v3867_v12 = vld [vmem:[#allocation42_spill] sm:$0xff] }
  0xe8   : > { %v1018_v7 = vadd.f32 %v1010_v19, %v978_v33  ;;  %v711_v22 = vadd.f32 %v703_v42, %v671_v34  ;;  %v2937_v48 = vmul.f32 %v3866_v20, %v2914_v38  ;;  %v825_v55 = vadd.f32 %v817_v63, %v771_v36  ;;  %v3869_v8 = vld [vmem:[#allocation30_spill] sm:$0xff]  ;;  %v3870_v19 = vld [vmem:[#allocation28_spill] sm:$0xff] }
  0xe9   : > { %v897_v3 = vmul.f32 %v3868_v16, %v3867_v12  ;;  %v1038_v60 = vadd.f32 %v1030_v31, %v998_v45  ;;  %v837_v33 = vmul.f32 %v3870_v19, %v3869_v8  ;;  %v3871_v42 = vld [vmem:[#allocation38_spill] sm:$0xff]  ;;  %v3876_v63 = vld [vmem:[#allocation36_spill] sm:$0xff]  ;;  %v3877_v31 = vld [vmem:[#allocation45_spill] sm:$0xff] }
  0xea   : > { %v1058_v26 = vadd.f32 %v1050_v10, %v1018_v7  ;;  %v751_v32 = vadd.f32 %v743_v41, %v711_v22  ;;  %v865_v34 = vadd.f32 %v857_v37, %v825_v55  ;;  %v877_v52 = vmul.f32 %v3872_v13, %v3871_v42  ;;  %v2945_v28 = vld [vmem:[#allocation2 + $0x84] sm:$0xff]  ;;  %v3878_v45 = vld [vmem:[#allocation87_spill] sm:$0xff] }
  0xeb   : > { %3873 = vst [vmem:[#allocation80_spill] sm:$0xff] %v2945_v28  ;;  %v3874_v35 = vld [vmem:[#allocation70_spill] sm:$0xff]  ;;  %v951_v36 = vmul.f32 %v3876_v63, %v2669_v56  ;;  %v1092_v38 = vadd.f32 %v1084_v50, %v1038_v60  ;;  %v971_v7 = vmul.f32 %v3878_v45, %v3843_v0  ;;  %v991_v55 = vmul.f32 %v3844_v23, %v3845_v39  ;;  %v3879_v60 = vld [vmem:[#allocation61_spill] sm:$0xff]  ;;  %v3883_v23 = vld [vmem:[#allocation84_spill] sm:$0xff] }
  0xec   : > { %v931_v20 = vmul.f32 %v3875_v61, %v3874_v35  ;;  %v1112_v12 = vadd.f32 %v1104_v40, %v1058_v26  ;;  %v805_v10 = vadd.f32 %v3877_v31, %v751_v32  ;;  %v905_v22 = vadd.f32 %v897_v3, %v865_v34  ;;  %v3880_v26 = vld [vmem:[#allocation15_spill] sm:$0xff]  ;;  %v3882_v34 = vld [vmem:[#allocation14_spill] sm:$0xff] }
  0xed   : > { %v1011_v37 = vmul.f32 %v3846_v43, %v3847_v53  ;;  %v1031_v35 = vmul.f32 %v3848_v25, %v2853_v47  ;;  %v1132_v41 = vadd.f32 %v1124_v27, %v1092_v38  ;;  %v1051_v50 = vmul.f32 %v3879_v60, %v2945_v28  ;;  %v3881_v3 = vld [vmem:[#allocation75_spill] sm:$0xff]  ;;  %v3884_v45 = vld [vmem:[#allocation22_spill] sm:$0xff]  ;;  %v3885_v27 = vld [vmem:[#allocation17_spill] sm:$0xff] }
  0xee   : > { %v1152_v8 = vadd.f32 %v1144_v21, %v1112_v12  ;;  %v845_v42 = vadd.f32 %v837_v33, %v805_v10  ;;  %v959_v40 = vadd.f32 %v951_v36, %v905_v22  ;;  %v1085_v32 = vmul.f32 %v3880_v26, %v2732_v62  ;;  %v3886_v33 = vld [vmem:[#allocation58_spill] sm:$0xff]  ;;  %v3887_v36 = vld [vmem:[#allocation71_spill] sm:$0xff] }
  0xef   : > { %v1105_v31 = vmul.f32 %v3882_v34, %v3881_v3  ;;  %v1125_v39 = vmul.f32 %v3884_v45, %v3883_v23  ;;  %v1172_v43 = vadd.f32 %v1164_v9, %v1132_v41  ;;  %v1145_v21 = vmul.f32 %v3885_v27, %v2756_v15  ;;  %v3888_v10 = vld [vmem:[#allocation66_spill] sm:$0xff] }
  0xf0   : > { %v1192_v53 = vadd.f32 %v1184_v59, %v1152_v8  ;;  %v885_v63 = vadd.f32 %v877_v52, %v845_v42  ;;  %v999_v38 = vadd.f32 %v991_v55, %v959_v40  ;;  %v1165_v12 = vmul.f32 %v3886_v33, %v3857_v1  ;;  %v3889_v41 = vld [vmem:[#allocation50_spill] sm:$0xff] }
  0xf1   : > { %v672_v22 = vadd.f32 %v3888_v10, %v3887_v36  ;;  %v704_v62 = vmul.f32 %v3864_v17, %v3772_v58  ;;  %v1212_v34 = vadd.f32 %v1204_v11, %v1172_v43  ;;  %v724_v9 = vmul.f32 %v2559_v6, %v3836_v4  ;;  %v3890_v10 = vld [vmem:[#allocation12_spill] sm:$0xff]  ;;  %v2985_v43 = vld [vmem:[#allocation2 + $0x43] sm:$0xff] }
  0xf2   : > { %v1246_v26 = vadd.f32 %v1238_v51, %v1192_v53  ;;  %v939_v3 = vadd.f32 %v931_v20, %v885_v63  ;;  %v1039_v59 = vadd.f32 %v1031_v35, %v999_v38  ;;  %v744_v55 = vmul.f32 %v2566_v2, %v3861_v18  ;;  %v2989_v63 = vld [vmem:[#allocation2 + $0x53] sm:$0xff] }
  0xf3   : > { %v712_v52 = vadd.f32 %v704_v62, %v672_v22  ;;  %v764_v8 = vmul.f32 %v2227_v57, %v3889_v41  ;;  %v1266_v42 = vadd.f32 %v2903_v24, %v1212_v34  ;;  %v732_v11 = vadd.f32 %v724_v9, %v3890_v10  ;;  %v2998_v22 = vld [vmem:[#allocation2 + $0x73] sm:$0xff]  ;;  %v3002_v9 = vld [vmem:[#allocation2 + $0x83] sm:$0xff] }
  0xf4   : > { %v1286_v40 = vadd.f32 %v2908_v46, %v1246_v26  ;;  %v979_v36 = vadd.f32 %v971_v7, %v939_v3  ;;  %v1093_v53 = vadd.f32 %v1085_v32, %v1039_v59  ;;  %v818_v51 = vmul.f32 %v2985_v43, %v2607_v14  ;;  %v2995_v7 = vld [vmem:[#allocation2 + $0x85] sm:$0xff]  ;;  %3892 = vst [vmem:[#allocation60_spill] sm:$0xff] %v2998_v22 }
  0xf5   : > { %v752_v20 = vadd.f32 %v744_v55, %v712_v52  ;;  %v838_v35 = vmul.f32 %v2989_v63, %v3870_v19  ;;  %v1306_v38 = vadd.f32 %v2921_v49, %v1266_v42  ;;  %v772_v26 = vadd.f32 %v764_v8, %v732_v11  ;;  %v3891_v3 = vld [vmem:[#allocation49_spill] sm:$0xff]  ;;  %3893 = vst [vmem:[#allocation68_spill] sm:$0xff] %v3002_v9  ;;  %v3010_v42 = vld [vmem:[#allocation2 + $0x93] sm:$0xff]  ;;  %v3895_v11 = vld [vmem:[#allocation26_spill] sm:$0xff] }
  0xf6   : > { %v1326_v24 = vadd.f32 %v2925_v29, %v1286_v40  ;;  %v1019_v46 = vadd.f32 %v1011_v37, %v979_v36  ;;  %v1133_v32 = vadd.f32 %v1125_v39, %v1093_v53  ;;  %v858_v62 = vmul.f32 %v2998_v22, %v2625_v30  ;;  %3894 = vst [vmem:[#allocation27_spill] sm:$0xff] %v3010_v42  ;;  %v3917_v30 = vld [vmem:[#allocation15_spill] sm:$0xff] }
  0xf7   : > { %v806_v34 = vadd.f32 %v3891_v3, %v752_v20  ;;  %v878_v59 = vmul.f32 %v3002_v9, %v3872_v13  ;;  %v1346_v49 = vadd.f32 %v2933_v5, %v1306_v38  ;;  %v826_v52 = vadd.f32 %v818_v51, %v772_v26  ;;  %v3896_v20 = vld [vmem:[#allocation69_spill] sm:$0xff] }
  0xf8   : > { %v1366_v29 = vadd.f32 %v2937_v48, %v1326_v24  ;;  %v1059_v37 = vadd.f32 %v1051_v50, %v1019_v46  ;;  %v1173_v39 = vadd.f32 %v1165_v12, %v1133_v32  ;;  %v1205_v55 = vmul.f32 %v3859_v54, %v2995_v7  ;;  %v3897_v50 = vld [vmem:[#allocation18_spill] sm:$0xff]  ;;  %v3898_v24 = vld [vmem:[#allocation19_spill] sm:$0xff]  ;;  %v3899_v46 = vld [vmem:[#allocation16_spill] sm:$0xff] }
  0xf9   : > { %v846_v8 = vadd.f32 %v838_v35, %v806_v34  ;;  %v898_v40 = vmul.f32 %v3010_v42, %v3868_v16  ;;  %v1185_v5 = vmul.f32 %v3895_v11, %v2872_v44  ;;  %v866_v53 = vadd.f32 %v858_v62, %v826_v52  ;;  %v3902_v62 = vld [vmem:[#allocation97_spill] sm:$0xff] }
  0xfa   : > { %v1374_v36 = vadd.f32 %v1366_v29, %v1346_v49  ;;  %v1113_v10 = vadd.f32 %v1105_v31, %v1059_v37  ;;  %v1213_v48 = vadd.f32 %v1205_v55, %v1173_v39  ;;  %v1259_v51 = vmul.f32 %v3897_v50, %v3896_v20  ;;  %v3900_v31 = vld [vmem:[#allocation36_spill] sm:$0xff]  ;;  %v3901_v49 = vld [vmem:[#allocation95_spill] sm:$0xff]  ;;  %v3903_v52 = vld [vmem:[#allocation57_spill] sm:$0xff] }
  0xfb   : > { %v886_v12 = vadd.f32 %v878_v59, %v846_v8  ;;  %v932_v38 = vmul.f32 %v3875_v61, %v2669_v56  ;;  %v1239_v26 = vmul.f32 %v3899_v46, %v3898_v24  ;;  %v906_v32 = vadd.f32 %v898_v40, %v866_v53  ;;  %v3904_v39 = vld [vmem:[#allocation87_spill] sm:$0xff]  ;;  %v3029_v8 = vld [vmem:[#allocation2 + $0x86] sm:$0xff]  ;;  %v3908_v53 = vld [vmem:[#allocation52_spill] sm:$0xff] }
  0xfc   : > { %1382 = vst [vmem:[%s2886_s24 + $0x8] sm:$0xff] %v1374_v36  ;;  %v1153_v35 = vadd.f32 %v1145_v21, %v1113_v10  ;;  %v952_v3 = vmul.f32 %v3900_v31, %v3843_v0  ;;  %v1267_v34 = vadd.f32 %v1259_v51, %v1213_v48  ;;  %v1279_v29 = vmul.f32 %v3902_v62, %v3901_v49  ;;  %v3905_v56 = vld [vmem:[#allocation99_spill] sm:$0xff]  ;;  %v3906_v21 = vld [vmem:[#allocation77_spill] sm:$0xff]  ;;  %v3909_v24 = vld [vmem:[#allocation56_spill] sm:$0xff] }
  0xfd   : > { %v940_v37 = vadd.f32 %v932_v38, %v886_v12  ;;  %v972_v59 = vmul.f32 %v3904_v39, %v3903_v52  ;;  %v1299_v36 = vmul.f32 %v3906_v21, %v3905_v56  ;;  %v3033_v10 = vld [vmem:[#allocation2 + $0x94] sm:$0xff]  ;;  %v992_v22 = vmul.f32 %v3909_v24, %v3908_v53  ;;  %v3911_v51 = vld [vmem:[#allocation53_spill] sm:$0xff]  ;;  %v3913_v12 = vld [vmem:[#allocation98_spill] sm:$0xff] }
  0xfe   : > { %v1193_v55 = vadd.f32 %v1185_v5, %v1153_v35  ;;  %3907 = vst [vmem:[#allocation43_spill] sm:$0xff] %v3033_v10  ;;  %v960_v40 = vadd.f32 %v952_v3, %v906_v32  ;;  %v3910_v48 = vld [vmem:[#allocation96_spill] sm:$0xff]  ;;  %v3912_v61 = vld [vmem:[#allocation39_spill] sm:$0xff]  ;;  %v3914_v5 = vld [vmem:[#allocation29_spill] sm:$0xff]  ;;  %v1032_v9 = vmul.f32 %v3848_v25, %v2945_v28  ;;  %v1052_v53 = vmul.f32 %v3879_v60, %v3033_v10 }
  0xff   : > { %v1319_v31 = vmul.f32 %v3911_v51, %v3910_v48  ;;  %v1339_v38 = vmul.f32 %v3913_v12, %v3912_v61  ;;  %v980_v0 = vadd.f32 %v972_v59, %v940_v37  ;;  %v1012_v35 = vmul.f32 %v3914_v5, %v2853_v47  ;;  %v3915_v32 = vld [vmem:[#allocation37_spill] sm:$0xff]  ;;  %v3916_v51 = vld [vmem:[#allocation75_spill] sm:$0xff] }
 0x100   : > { %v1247_v39 = vadd.f32 %v1239_v26, %v1193_v55  ;;  %v1307_v52 = vadd.f32 %v1299_v36, %v1267_v34  ;;  %v1000_v16 = vadd.f32 %v992_v22, %v960_v40  ;;  %v1359_v3 = vmul.f32 %v3915_v32, %v3029_v8  ;;  %v3051_v61 = vld [vmem:[#allocation2 + $0x95] sm:$0xff]  ;;  %v3918_v26 = vld [vmem:[#allocation14_spill] sm:$0xff] }
 0x101   : > { %v1020_v24 = vadd.f32 %v1012_v35, %v980_v0  ;;  %v1086_v12 = vmul.f32 %v3917_v30, %v3916_v51  ;;  %v1106_v22 = vmul.f32 %v3918_v26, %v3883_v23  ;;  %v1126_v34 = vmul.f32 %v3884_v45, %v2756_v15  ;;  %v3920_v51 = vld [vmem:[#allocation93_spill] sm:$0xff] }
 0x102   : > { %v1287_v37 = vadd.f32 %v1279_v29, %v1247_v39  ;;  %v1040_v59 = vadd.f32 %v1032_v9, %v1000_v16  ;;  %v1146_v0 = vmul.f32 %v3885_v27, %v3857_v1  ;;  %v1166_v36 = vmul.f32 %v3886_v33, %v2872_v44  ;;  %v3919_v39 = vld [vmem:[#allocation94_spill] sm:$0xff]  ;;  %v3921_v44 = vld [vmem:[#allocation65_spill] sm:$0xff] }
 0x103   : > { %v1060_v55 = vadd.f32 %v1052_v53, %v1020_v24  ;;  %v1186_v40 = vmul.f32 %v3895_v11, %v2995_v7  ;;  %v1347_v16 = vadd.f32 %v1339_v38, %v1307_v52  ;;  %v599_v35 = vadd.f32 %v3920_v51, %v3919_v39  ;;  %v3922_v52 = vld [vmem:[#allocation24_spill] sm:$0xff] }
 0x104   : > { %v1327_v29 = vadd.f32 %v1319_v31, %v1287_v37  ;;  %v1094_v9 = vadd.f32 %v1086_v12, %v1040_v59  ;;  %v1206_v45 = vmul.f32 %v3859_v54, %v3051_v61  ;;  %v1240_v53 = vmul.f32 %v3899_v46, %v3896_v20  ;;  %v3923_v37 = vld [vmem:[#allocation44_spill] sm:$0xff] }
 0x105   : > { %v1114_v26 = vadd.f32 %v1106_v22, %v1060_v55  ;;  %v705_v24 = vmul.f32 %v3864_v17, %v3836_v4  ;;  %v653_v31 = vadd.f32 %v3921_v44, %v599_v35  ;;  %v685_v12 = vmul.f32 %v3922_v52, %v3772_v58  ;;  %v3924_v55 = vld [vmem:[#allocation25_spill] sm:$0xff] }
 0x106   : > { %v1367_v33 = vadd.f32 %v1359_v3, %v1327_v29  ;;  %v1134_v27 = vadd.f32 %v1126_v34, %v1094_v9  ;;  %v745_v22 = vmul.f32 %v2566_v2, %v3889_v41  ;;  %v799_v20 = vmul.f32 %v2985_v43, %v3924_v55  ;;  %v3925_v43 = vld [vmem:[#allocation72_spill] sm:$0xff] }
 0x107   : > { %v1154_v38 = vadd.f32 %v1146_v0, %v1114_v26  ;;  %v713_v59 = vadd.f32 %v705_v24, %v3923_v37  ;;  %v693_v4 = vadd.f32 %v685_v12, %v653_v31  ;;  %v725_v3 = vmul.f32 %v2559_v6, %v3861_v18  ;;  %v3083_v26 = vld [vmem:[#allocation2 + $0x63] sm:$0xff]  ;;  %v3096_v24 = vld [vmem:[#allocation2 + $0x96] sm:$0xff] }
 0x108   : > { %v1375_v39 = vadd.f32 %v1367_v33, %v1347_v16  ;;  %v1174_v51 = vadd.f32 %v1166_v36, %v1134_v27  ;;  %v1260_v44 = vmul.f32 %v3897_v50, %v3901_v49  ;;  %v839_v0 = vmul.f32 %v3083_v26, %v3870_v19  ;;  %3926 = vst [vmem:[#allocation92_spill] sm:$0xff] %v3096_v24 }
 0x109   : > { %v1194_v34 = vadd.f32 %v1186_v40, %v1154_v38  ;;  %v753_v58 = vadd.f32 %v745_v22, %v713_v59  ;;  %v733_v9 = vadd.f32 %v725_v3, %v693_v4  ;;  %v765_v27 = vmul.f32 %v2227_v57, %v3925_v43  ;;  %v3927_v38 = vld [vmem:[#allocation21_spill] sm:$0xff]  ;;  %v3928_v57 = vld [vmem:[#allocation68_spill] sm:$0xff] }
 0x10a   : > { %1383 = vst [vmem:[%s2886_s24 + $0x10] sm:$0xff] %v1375_v39  ;;  %v1214_v29 = vadd.f32 %v1206_v45, %v1174_v51  ;;  %v819_v33 = vmul.f32 %v2989_v63, %v2607_v14  ;;  %v1280_v40 = vmul.f32 %v3902_v62, %v3905_v56  ;;  %v879_v35 = vmul.f32 %v3010_v42, %v3872_v13  ;;  %v1619_v59 = vld [vmem:[#allocation2 + $0xb2] sm:$0xff] }
 0x10b   : > { %v1248_v36 = vadd.f32 %v1240_v53, %v1194_v34  ;;  %v807_v16 = vadd.f32 %v799_v20, %v753_v58  ;;  %v1300_v45 = vmul.f32 %v3906_v21, %v3910_v48  ;;  %v773_v12 = vadd.f32 %v765_v27, %v733_v9  ;;  %v3930_v39 = vld [vmem:[#allocation39_spill] sm:$0xff]  ;;  %v3931_v20 = vld [vmem:[#allocation53_spill] sm:$0xff]  ;;  %v3932_v34 = vld [vmem:[#allocation98_spill] sm:$0xff] }
 0x10c   : > { %v1268_v31 = vadd.f32 %v1260_v44, %v1214_v29  ;;  %v859_v37 = vmul.f32 %v3928_v57, %v3927_v38  ;;  %v3103_v53 = vmul.f32 %v1619_v59, %v2566_v2  ;;  %v1320_v51 = vmul.f32 %v3931_v20, %v3930_v39  ;;  %v3109_v29 = vld [vmem:[#allocation2 + $0xa3] sm:$0xff]  ;;  %v3933_v9 = vld [vmem:[#allocation79_spill] sm:$0xff] }
 0x10d   : > { %v1288_v22 = vadd.f32 %v1280_v40, %v1248_v36  ;;  %v847_v4 = vadd.f32 %v839_v0, %v807_v16  ;;  %v1340_v44 = vmul.f32 %v3932_v34, %v3029_v8  ;;  %v827_v58 = vadd.f32 %v819_v33, %v773_v12  ;;  %v3934_v36 = vld [vmem:[#allocation51_spill] sm:$0xff]  ;;  %v3935_v40 = vld [vmem:[#allocation73_spill] sm:$0xff]  ;;  %v3937_v16 = vld [vmem:[#allocation46_spill] sm:$0xff] }
 0x10e   : > { %3929 = vst [vmem:[#allocation74_spill] sm:$0xff] %v3103_v53  ;;  %v1308_v3 = vadd.f32 %v1300_v45, %v1268_v31  ;;  %v899_v43 = vmul.f32 %v3109_v29, %v3933_v9  ;;  %v1360_v59 = vmul.f32 %v3915_v32, %v3096_v24  ;;  %v933_v53 = vmul.f32 %v3935_v40, %v3934_v36  ;;  %v1621_v20 = vld [vmem:[#allocation2 + $0xc2] sm:$0xff]  ;;  %v3943_v32 = vld [vmem:[#allocation52_spill] sm:$0xff]  ;;  %v3944_v36 = vld [vmem:[#allocation87_spill] sm:$0xff] }
 0x10f   : > { %v1328_v27 = vadd.f32 %v1320_v51, %v1288_v22  ;;  %v887_v57 = vadd.f32 %v879_v35, %v847_v4  ;;  %v3118_v0 = vmul.f32 %v1621_v20, %v2566_v2  ;;  %v3938_v31 = vld [vmem:[#allocation81_spill] sm:$0xff]  ;;  %v867_v12 = vadd.f32 %v859_v37, %v827_v58  ;;  %v3942_v35 = vld [vmem:[#allocation36_spill] sm:$0xff] }
 0x110   : > { %v3122_v33 = vadd.f32 %v3938_v31, %v3937_v16  ;;  %v1348_v45 = vadd.f32 %v1340_v44, %v1308_v3  ;;  %v3124_v34 = vld [vmem:[#allocation2 + $0xa4] sm:$0xff]  ;;  %v973_v40 = vmul.f32 %v3944_v36, %v3943_v32  ;;  %v3945_v2 = vld [vmem:[#allocation56_spill] sm:$0xff]  ;;  %v1013_v16 = vmul.f32 %v3914_v5, %v2945_v28 }
 0x111   : > { %3936 = vst [vmem:[#allocation35_spill] sm:$0xff] %v3118_v0  ;;  %3940 = vst [vmem:[#allocation31_spill] sm:$0xff] %v3124_v34  ;;  %v1368_v22 = vadd.f32 %v1360_v59, %v1328_v27  ;;  %v941_v51 = vadd.f32 %v933_v53, %v887_v57  ;;  %v3941_v9 = vld [vmem:[#allocation57_spill] sm:$0xff]  ;;  %v907_v24 = vadd.f32 %v899_v43, %v867_v12  ;;  %v3946_v43 = vld [vmem:[#allocation14_spill] sm:$0xff] }
 0x112   : > { %3939 = vst [vmem:[#allocation67_spill] sm:$0xff] %v3122_v33  ;;  %v953_v4 = vmul.f32 %v3942_v35, %v3941_v9  ;;  %v993_v20 = vmul.f32 %v3945_v2, %v2853_v47  ;;  %v1033_v37 = vmul.f32 %v3848_v25, %v3033_v10  ;;  %v1053_v57 = vmul.f32 %v3879_v60, %v3124_v34  ;;  %v3947_v59 = vld [vmem:[#allocation47_spill] sm:$0xff]  ;;  %v3948_v31 = vld [vmem:[#allocation88_spill] sm:$0xff]  ;;  %v3953_v60 = vld [vmem:[#allocation17_spill] sm:$0xff] }
 0x113   : > { %v1376_v3 = vadd.f32 %v1368_v22, %v1348_v45  ;;  %v981_v44 = vadd.f32 %v973_v40, %v941_v51  ;;  %v1087_v53 = vmul.f32 %v3917_v30, %v3883_v23  ;;  %v1107_v27 = vmul.f32 %v3946_v43, %v2756_v15  ;;  %v3949_v0 = vld [vmem:[#allocation64_spill] sm:$0xff]  ;;  %v3950_v33 = vld [vmem:[#allocation23_spill] sm:$0xff]  ;;  %v3147_v45 = vld [vmem:[#allocation2 + $0xa5] sm:$0xff] }
 0x114   : > { %v961_v58 = vadd.f32 %v953_v4, %v907_v24  ;;  %v600_v12 = vadd.f32 %v3948_v31, %v3947_v59  ;;  %v646_v5 = vmul.f32 %v3950_v33, %v3949_v0  ;;  %v3951_v40 = vld [vmem:[#allocation22_spill] sm:$0xff]  ;;  %v706_v24 = vmul.f32 %v3864_v17, %v3861_v18  ;;  %v3157_v30 = vld [vmem:[#allocation2 + $0x72] sm:$0xff] }
 0x115   : > { %1384 = vst [vmem:[%s2886_s24 + $0x18] sm:$0xff] %v1376_v3  ;;  %v1021_v25 = vadd.f32 %v1013_v16, %v981_v44  ;;  %v1127_v22 = vmul.f32 %v3951_v40, %v3857_v1  ;;  %v3952_v51 = vld [vmem:[#allocation34_spill] sm:$0xff]  ;;  %3955 = vst [vmem:[#allocation33_spill] sm:$0xff] %v3157_v30  ;;  %v686_v0 = vmul.f32 %v3157_v30, %v3922_v52  ;;  %v3956_v44 = vld [vmem:[#allocation20_spill] sm:$0xff] }
 0x116   : > { %v1147_v23 = vmul.f32 %v3953_v60, %v3952_v51  ;;  %v1001_v4 = vadd.f32 %v993_v20, %v961_v58  ;;  %v3954_v43 = vld [vmem:[#allocation58_spill] sm:$0xff]  ;;  %v654_v31 = vadd.f32 %v646_v5, %v600_v12  ;;  %v1187_v3 = vmul.f32 %v3895_v11, %v3051_v61  ;;  %v3958_v30 = vld [vmem:[#allocation60_spill] sm:$0xff] }
 0x117   : > { %v1167_v59 = vmul.f32 %v3954_v43, %v2995_v7  ;;  %v1061_v16 = vadd.f32 %v1053_v57, %v1021_v25  ;;  %v714_v33 = vadd.f32 %v706_v24, %v3956_v44  ;;  %v800_v60 = vmul.f32 %v2989_v63, %v3924_v55  ;;  %v3957_v57 = vld [vmem:[#allocation13_spill] sm:$0xff] }
 0x118   : > { %v1041_v17 = vadd.f32 %v1033_v37, %v1001_v4  ;;  %v1207_v18 = vmul.f32 %v3859_v54, %v3147_v45  ;;  %v694_v20 = vadd.f32 %v686_v0, %v654_v31  ;;  %v726_v5 = vmul.f32 %v2559_v6, %v3889_v41  ;;  %v3179_v0 = vld [vmem:[#allocation2 + $0xa6] sm:$0xff]  ;;  %v3183_v41 = vld [vmem:[#allocation2 + $0xb3] sm:$0xff] }
 0x119   : > { %v1115_v58 = vadd.f32 %v1107_v27, %v1061_v16  ;;  %v1241_v25 = vmul.f32 %v3899_v46, %v3901_v49  ;;  %v754_v12 = vadd.f32 %v3957_v57, %v714_v33  ;;  %v840_v24 = vmul.f32 %v3958_v30, %v3870_v19  ;;  %v3959_v16 = vld [vmem:[#allocation85_spill] sm:$0xff]  ;;  %v3961_v57 = vld [vmem:[#allocation92_spill] sm:$0xff] }
 0x11a   : > { %v1095_v44 = vadd.f32 %v1087_v53, %v1041_v17  ;;  %v1261_v63 = vmul.f32 %v3897_v50, %v3905_v56  ;;  %v734_v37 = vadd.f32 %v726_v5, %v694_v20  ;;  %v820_v4 = vmul.f32 %v3083_v26, %v2607_v14  ;;  %v3960_v5 = vld [vmem:[#allocation53_spill] sm:$0xff]  ;;  %v3200_v46 = vld [vmem:[#allocation2 + $0xb4] sm:$0xff] }
 0x11b   : > { %v1155_v31 = vadd.f32 %v1147_v23, %v1115_v58  ;;  %v1281_v6 = vmul.f32 %v3902_v62, %v3910_v48  ;;  %v808_v49 = vadd.f32 %v800_v60, %v754_v12  ;;  %v880_v33 = vmul.f32 %v3109_v29, %v3872_v13  ;;  %v3962_v62 = vld [vmem:[#allocation98_spill] sm:$0xff]  ;;  %v3963_v48 = vld [vmem:[#allocation37_spill] sm:$0xff] }
 0x11c   : > { %v1135_v53 = vadd.f32 %v1127_v22, %v1095_v44  ;;  %v1301_v27 = vmul.f32 %v3906_v21, %v3930_v39  ;;  %v774_v17 = vadd.f32 %v3959_v16, %v734_v37  ;;  %v860_v23 = vmul.f32 %v3010_v42, %v3927_v38  ;;  %v3964_v21 = vld [vmem:[#allocation79_spill] sm:$0xff] }
 0x11d   : > { %v1195_v20 = vadd.f32 %v1187_v3, %v1155_v31  ;;  %v1321_v58 = vmul.f32 %v3960_v5, %v3029_v8  ;;  %v1341_v50 = vmul.f32 %v3962_v62, %v3961_v57  ;;  %v848_v60 = vadd.f32 %v840_v24, %v808_v49  ;;  %v3965_v3 = vld [vmem:[#allocation73_spill] sm:$0xff] }
 0x11e   : > { %v1175_v12 = vadd.f32 %v1167_v59, %v1135_v53  ;;  %v1361_v22 = vmul.f32 %v3963_v48, %v3179_v0  ;;  %v828_v44 = vadd.f32 %v820_v4, %v774_v17  ;;  %v900_v39 = vmul.f32 %v3964_v21, %v3183_v41  ;;  %v3967_v17 = vld [vmem:[#allocation40_spill] sm:$0xff]  ;;  %v3968_v48 = vld [vmem:[#allocation61_spill] sm:$0xff] }
 0x11f   : > { %v1249_v37 = vadd.f32 %v1241_v25, %v1195_v20  ;;  %v888_v16 = vadd.f32 %v880_v33, %v848_v60  ;;  %v934_v31 = vmul.f32 %v3965_v3, %v3941_v9  ;;  %v954_v42 = vmul.f32 %v3942_v35, %v3943_v32  ;;  %v3966_v25 = vld [vmem:[#allocation29_spill] sm:$0xff] }
 0x120   : > { %v1215_v62 = vadd.f32 %v1207_v18, %v1175_v12  ;;  %v868_v24 = vadd.f32 %v860_v23, %v828_v44  ;;  %v974_v59 = vmul.f32 %v3944_v36, %v2853_v47  ;;  %v994_v4 = vmul.f32 %v3945_v2, %v2945_v28  ;;  %v3969_v23 = vld [vmem:[#allocation15_spill] sm:$0xff]  ;;  %v3970_v2 = vld [vmem:[#allocation14_spill] sm:$0xff] }
 0x121   : > { %v1289_v49 = vadd.f32 %v1281_v6, %v1249_v37  ;;  %v942_v53 = vadd.f32 %v934_v31, %v888_v16  ;;  %v1014_v33 = vmul.f32 %v3966_v25, %v3033_v10  ;;  %v1034_v20 = vmul.f32 %v3967_v17, %v3124_v34  ;;  %v1623_v37 = vld [vmem:[#allocation2 + $0x82] sm:$0xff]  ;;  %v3971_v25 = vld [vmem:[#allocation83_spill] sm:$0xff] }
 0x122   : > { %v1269_v9 = vadd.f32 %v1261_v63, %v1215_v62  ;;  %v908_v60 = vadd.f32 %v900_v39, %v868_v24  ;;  %v1054_v18 = vmul.f32 %v3968_v48, %v3200_v46  ;;  %v1088_v12 = vmul.f32 %v3969_v23, %v2756_v15  ;;  %v3972_v17 = vld [vmem:[#allocation63_spill] sm:$0xff] }
 0x123   : > { %v1329_v44 = vadd.f32 %v1321_v58, %v1289_v49  ;;  %v982_v35 = vadd.f32 %v974_v59, %v942_v53  ;;  %v1108_v6 = vmul.f32 %v3970_v2, %v3857_v1  ;;  %v687_v16 = vmul.f32 %v1623_v37, %v3922_v52  ;;  %v3973_v58 = vld [vmem:[#allocation67_spill] sm:$0xff]  ;;  %v3974_v2 = vld [vmem:[#allocation74_spill] sm:$0xff] }
 0x124   : > { %v1309_v31 = vadd.f32 %v1301_v27, %v1269_v9  ;;  %v962_v10 = vadd.f32 %v954_v42, %v908_v60  ;;  %v715_v62 = vadd.f32 %v3972_v17, %v3971_v25  ;;  %v801_v39 = vmul.f32 %v3083_v26, %v3924_v55  ;;  %v3975_v42 = vld [vmem:[#allocation68_spill] sm:$0xff]  ;;  %v3976_v26 = vld [vmem:[#allocation17_spill] sm:$0xff] }
 0x125   : > { %v1369_v63 = vadd.f32 %v1361_v22, %v1329_v44  ;;  %v1022_v24 = vadd.f32 %v1014_v33, %v982_v35  ;;  %v1128_v15 = vmul.f32 %v3951_v40, %v3952_v51  ;;  %v695_v59 = vadd.f32 %v687_v16, %v3973_v58  ;;  %v3231_v25 = vld [vmem:[#allocation2 + $0xb5] sm:$0xff]  ;;  %v3977_v35 = vld [vmem:[#allocation82_spill] sm:$0xff] }
 0x126   : > { %v1349_v49 = vadd.f32 %v1341_v50, %v1309_v31  ;;  %v1002_v53 = vadd.f32 %v994_v4, %v962_v10  ;;  %v755_v52 = vadd.f32 %v3974_v2, %v715_v62  ;;  %v841_v27 = vmul.f32 %v3975_v42, %v3870_v19  ;;  %v3978_v44 = vld [vmem:[#allocation86_spill] sm:$0xff] }
 0x127   : > { %v1062_v9 = vadd.f32 %v1054_v18, %v1022_v24  ;;  %v1148_v22 = vmul.f32 %v3976_v26, %v2995_v7  ;;  %v735_v33 = vadd.f32 %v3977_v35, %v695_v59  ;;  %v821_v17 = vmul.f32 %v3958_v30, %v2607_v14  ;;  %v3979_v24 = vld [vmem:[#allocation16_spill] sm:$0xff] }
 0x128   : > { %v1377_v60 = vadd.f32 %v1369_v63, %v1349_v49  ;;  %v1042_v50 = vadd.f32 %v1034_v20, %v1002_v53  ;;  %v1168_v10 = vmul.f32 %v3954_v43, %v3051_v61  ;;  %v809_v2 = vadd.f32 %v801_v39, %v755_v52  ;;  %v3248_v63 = vld [vmem:[#allocation2 + $0xc3] sm:$0xff]  ;;  %v3980_v59 = vld [vmem:[#allocation96_spill] sm:$0xff] }
 0x129   : > { %v1116_v4 = vadd.f32 %v1108_v6, %v1062_v9  ;;  %v1188_v18 = vmul.f32 %v3895_v11, %v3147_v45  ;;  %v775_v37 = vadd.f32 %v3978_v44, %v735_v33  ;;  %v861_v16 = vmul.f32 %v3109_v29, %v3927_v38  ;;  %v3981_v49 = vld [vmem:[#allocation18_spill] sm:$0xff]  ;;  %v3982_v9 = vld [vmem:[#allocation39_spill] sm:$0xff] }
 0x12a   : > { %1385 = vst [vmem:[%s2886_s24 + $0x20] sm:$0xff] %v1377_v60  ;;  %v1096_v31 = vadd.f32 %v1088_v12, %v1042_v50  ;;  %v1208_v62 = vmul.f32 %v3859_v54, %v3231_v25  ;;  %v849_v20 = vadd.f32 %v841_v27, %v809_v2  ;;  %v881_v39 = vmul.f32 %v3872_v13, %v3183_v41  ;;  %v3983_v12 = vld [vmem:[#allocation97_spill] sm:$0xff]  ;;  %v3260_v50 = vld [vmem:[#allocation2 + $0xb6] sm:$0xff] }
 0x12b   : > { %v1156_v6 = vadd.f32 %v1148_v22, %v1116_v4  ;;  %v1242_v58 = vmul.f32 %v3979_v24, %v3905_v56  ;;  %v1262_v53 = vmul.f32 %v3981_v49, %v3980_v59  ;;  %v829_v52 = vadd.f32 %v821_v17, %v775_v37  ;;  %v3984_v22 = vld [vmem:[#allocation77_spill] sm:$0xff] }
 0x12c   : > { %v1136_v29 = vadd.f32 %v1128_v15, %v1096_v31  ;;  %v1282_v35 = vmul.f32 %v3983_v12, %v3982_v9  ;;  %v889_v33 = vadd.f32 %v881_v39, %v849_v20  ;;  %v935_v60 = vmul.f32 %v3965_v3, %v3943_v32  ;;  %v3985_v32 = vld [vmem:[#allocation98_spill] sm:$0xff] }
 0x12d   : > { %v1196_v27 = vadd.f32 %v1188_v18, %v1156_v6  ;;  %v1302_v2 = vmul.f32 %v3984_v22, %v3029_v8  ;;  %v869_v4 = vadd.f32 %v861_v16, %v829_v52  ;;  %v901_v56 = vmul.f32 %v3964_v21, %v3248_v63  ;;  %v3272_v39 = vld [vmem:[#allocation2 + $0xc4] sm:$0xff]  ;;  %v3987_v16 = vld [vmem:[#allocation36_spill] sm:$0xff] }
 0x12e   : > { %v1176_v44 = vadd.f32 %v1168_v10, %v1136_v29  ;;  %v1322_v15 = vmul.f32 %v3960_v5, %v3961_v57  ;;  %v943_v17 = vadd.f32 %v935_v60, %v889_v33  ;;  %v975_v37 = vmul.f32 %v3944_v36, %v2945_v28  ;;  %3986 = vst [vmem:[#allocation91_spill] sm:$0xff] %v3272_v39  ;;  %v3988_v10 = vld [vmem:[#allocation37_spill] sm:$0xff] }
 0x12f   : > { %v1250_v31 = vadd.f32 %v1242_v58, %v1196_v27  ;;  %v1342_v18 = vmul.f32 %v3985_v32, %v3179_v0  ;;  %v909_v20 = vadd.f32 %v901_v56, %v869_v4  ;;  %v955_v6 = vmul.f32 %v3987_v16, %v2853_v47  ;;  %v3989_v33 = vld [vmem:[#allocation29_spill] sm:$0xff]  ;;  %v3990_v58 = vld [vmem:[#allocation43_spill] sm:$0xff]  ;;  %v3991_v27 = vld [vmem:[#allocation56_spill] sm:$0xff] }
 0x130   : > { %v1216_v52 = vadd.f32 %v1208_v62, %v1176_v44  ;;  %v1362_v29 = vmul.f32 %v3988_v10, %v3260_v50  ;;  %v983_v21 = vadd.f32 %v975_v37, %v943_v17  ;;  %v1015_v60 = vmul.f32 %v3989_v33, %v3124_v34  ;;  %v3992_v4 = vld [vmem:[#allocation40_spill] sm:$0xff]  ;;  %v3993_v34 = vld [vmem:[#allocation14_spill] sm:$0xff]  ;;  %v3996_v10 = vld [vmem:[#allocation23_spill] sm:$0xff] }
 0x131   : > { %v1290_v22 = vadd.f32 %v1282_v35, %v1250_v31  ;;  %v963_v28 = vadd.f32 %v955_v6, %v909_v20  ;;  %v995_v57 = vmul.f32 %v3991_v27, %v3990_v58  ;;  %v1035_v56 = vmul.f32 %v3992_v4, %v3200_v46  ;;  %v3994_v31 = vld [vmem:[#allocation76_spill] sm:$0xff]  ;;  %v3995_v20 = vld [vmem:[#allocation54_spill] sm:$0xff]  ;;  %v3997_v4 = vld [vmem:[#allocation33_spill] sm:$0xff] }
 0x132   : > { %v1270_v32 = vadd.f32 %v1262_v53, %v1216_v52  ;;  %v1023_v36 = vadd.f32 %v1015_v60, %v983_v21  ;;  %v1055_v62 = vmul.f32 %v3968_v48, %v3272_v39  ;;  %v1089_v44 = vmul.f32 %v3969_v23, %v3857_v1  ;;  %v3998_v21 = vld [vmem:[#allocation32_spill] sm:$0xff]  ;;  %v3999_v52 = vld [vmem:[#allocation62_spill] sm:$0xff] }
 0x133   : > { %v1330_v17 = vadd.f32 %v1322_v15, %v1290_v22  ;;  %v1003_v37 = vadd.f32 %v995_v57, %v963_v28  ;;  %v1109_v35 = vmul.f32 %v3993_v34, %v3952_v51  ;;  %v602_v6 = vadd.f32 %v3995_v20, %v3994_v31  ;;  %v4003_v31 = vld [vmem:[#allocation41_spill] sm:$0xff] }
 0x134   : > { %v1310_v27 = vadd.f32 %v1302_v2, %v1270_v32  ;;  %v1063_v16 = vadd.f32 %v1055_v62, %v1023_v36  ;;  %v648_v53 = vmul.f32 %v3997_v4, %v3996_v10  ;;  %v716_v60 = vadd.f32 %v3999_v52, %v3998_v21  ;;  %v4000_v2 = vld [vmem:[#allocation35_spill] sm:$0xff] }
 0x135   : > { %v1370_v39 = vadd.f32 %v1362_v29, %v1330_v17  ;;  %v1043_v48 = vadd.f32 %v1035_v56, %v1003_v37  ;;  %v1149_v1 = vmul.f32 %v3976_v26, %v3051_v61  ;;  %v802_v28 = vmul.f32 %v3958_v30, %v3924_v55  ;;  %v4001_v4 = vld [vmem:[#allocation27_spill] sm:$0xff]  ;;  %v1077_v17 = vld [vmem:[#allocation2 + $0xc5] sm:$0xff] }
 0x136   : > { %v1350_v57 = vadd.f32 %v1342_v18, %v1310_v27  ;;  %v1117_v22 = vadd.f32 %v1109_v35, %v1063_v16  ;;  %v656_v15 = vadd.f32 %v648_v53, %v602_v6  ;;  %v756_v36 = vadd.f32 %v4000_v2, %v716_v60  ;;  %v4002_v30 = vld [vmem:[#allocation55_spill] sm:$0xff]  ;;  %v4004_v60 = vld [vmem:[#allocation89_spill] sm:$0xff] }
 0x137   : > { %v1097_v32 = vadd.f32 %v1089_v44, %v1043_v48  ;;  %v1129_v10 = vmul.f32 %v3951_v40, %v2995_v7  ;;  %v1189_v29 = vmul.f32 %v3895_v11, %v3231_v25  ;;  %v842_v56 = vmul.f32 %v4001_v4, %v3870_v19  ;;  %v4006_v4 = vld [vmem:[#allocation92_spill] sm:$0xff] }
 0x138   : > { %v1378_v62 = vadd.f32 %v1370_v39, %v1350_v57  ;;  %v1157_v37 = vadd.f32 %v1149_v1, %v1117_v22  ;;  %v696_v55 = vadd.f32 %v4002_v30, %v656_v15  ;;  %v810_v18 = vadd.f32 %v802_v28, %v756_v36  ;;  %v790_v1 = vld [vmem:[#allocation2 + $0xd3] sm:$0xff]  ;;  %v1231_v22 = vld [vmem:[#allocation2 + $0xc6] sm:$0xff] }
 0x139   : > { %v1137_v16 = vadd.f32 %v1129_v10, %v1097_v32  ;;  %v1169_v27 = vmul.f32 %v3954_v43, %v3147_v45  ;;  %v1243_v48 = vmul.f32 %v3979_v24, %v3980_v59  ;;  %v822_v44 = vmul.f32 %v3975_v42, %v2607_v14  ;;  %v4005_v32 = vld [vmem:[#allocation87_spill] sm:$0xff] }
 0x13a   : > { %1386 = vst [vmem:[%s2886_s24 + $0x28] sm:$0xff] %v1378_v62  ;;  %v1197_v35 = vadd.f32 %v1189_v29, %v1157_v37  ;;  %v736_v19 = vadd.f32 %v4003_v31, %v696_v55  ;;  %v850_v39 = vadd.f32 %v842_v56, %v810_v18  ;;  %v882_v20 = vmul.f32 %v3872_v13, %v3248_v63  ;;  %v4008_v56 = vld [vmem:[#allocation79_spill] sm:$0xff]  ;;  %v4012_v31 = vld [vmem:[#allocation36_spill] sm:$0xff] }
 0x13b   : > { %v1177_v6 = vadd.f32 %v1169_v27, %v1137_v16  ;;  %v1209_v53 = vmul.f32 %v3859_v54, %v1077_v17  ;;  %v1283_v21 = vmul.f32 %v3983_v12, %v3029_v8  ;;  %v936_v14 = vmul.f32 %v3965_v3, %v2853_v47  ;;  %v4007_v47 = vld [vmem:[#allocation77_spill] sm:$0xff]  ;;  %v924_v37 = vld [vmem:[#allocation2 + $0xd4] sm:$0xff]  ;;  %v4009_v16 = vld [vmem:[#allocation98_spill] sm:$0xff] }
 0x13c   : > { %v1251_v52 = vadd.f32 %v1243_v48, %v1197_v35  ;;  %v776_v59 = vadd.f32 %v4004_v60, %v736_v19  ;;  %v890_v28 = vadd.f32 %v882_v20, %v850_v39  ;;  %v1263_v57 = vmul.f32 %v3981_v49, %v3982_v9  ;;  %v4010_v48 = vld [vmem:[#allocation37_spill] sm:$0xff]  ;;  %v4011_v35 = vld [vmem:[#allocation80_spill] sm:$0xff]  ;;  %v4014_v60 = vld [vmem:[#allocation31_spill] sm:$0xff] }
 0x13d   : > { %v1217_v42 = vadd.f32 %v1209_v53, %v1177_v6  ;;  %v1323_v13 = vmul.f32 %v3960_v5, %v3179_v0  ;;  %v862_v63 = vmul.f32 %v3927_v38, %v3183_v41  ;;  %v976_v10 = vmul.f32 %v4005_v32, %v3990_v58  ;;  %v4013_v20 = vld [vmem:[#allocation61_spill] sm:$0xff] }
 0x13e   : > { %v1291_v15 = vadd.f32 %v1283_v21, %v1251_v52  ;;  %v830_v2 = vadd.f32 %v822_v44, %v776_v59  ;;  %v944_v36 = vadd.f32 %v936_v14, %v890_v28  ;;  %v1303_v3 = vmul.f32 %v4007_v47, %v4006_v4  ;;  %v4015_v59 = vld [vmem:[#allocation56_spill] sm:$0xff] }
 0x13f   : > { %v1271_v29 = vadd.f32 %v1263_v57, %v1217_v42  ;;  %v902_v62 = vmul.f32 %v4008_v56, %v790_v1  ;;  %v1016_v38 = vmul.f32 %v3989_v33, %v3200_v46  ;;  %v1343_v27 = vmul.f32 %v4009_v16, %v3260_v50  ;;  %v4016_v42 = vld [vmem:[#allocation91_spill] sm:$0xff]  ;;  %v4017_v57 = vld [vmem:[#allocation40_spill] sm:$0xff] }
 0x140   : > { %v1331_v30 = vadd.f32 %v1323_v13, %v1291_v15  ;;  %v870_v55 = vadd.f32 %v862_v63, %v830_v2  ;;  %v984_v18 = vadd.f32 %v976_v10, %v944_v36  ;;  %v1363_v44 = vmul.f32 %v4010_v48, %v1231_v22  ;;  %v1078_v56 = vld [vmem:[#allocation2 + $0xd5] sm:$0xff] }
 0x141   : > { %v1311_v41 = vadd.f32 %v1303_v3, %v1271_v29  ;;  %v956_v19 = vmul.f32 %v4012_v31, %v4011_v35  ;;  %v1056_v6 = vmul.f32 %v4013_v20, %v924_v37  ;;  %v996_v46 = vmul.f32 %v4015_v59, %v4014_v60  ;;  %v1624_v37 = vld [vmem:[#allocation6 + $0x30] ss:$0 sm:$0xff] }
 0x142   : > { %v910_v58 = vadd.f32 %v902_v62, %v870_v55  ;;  %v1024_v39 = vadd.f32 %v1016_v38, %v984_v18  ;;  %v1371_v21 = vadd.f32 %v1363_v44, %v1331_v30  ;;  %v1110_v1 = vmul.f32 %v3993_v34, %v2995_v7 }
 0x143   : > { %v1351_v53 = vadd.f32 %v1343_v27, %v1311_v41  ;;  %v1036_v13 = vmul.f32 %v4017_v57, %v4016_v42  ;;  %v1150_v15 = vmul.f32 %v3976_v26, %v3147_v45  ;;  %v1090_v36 = vmul.f32 %v3969_v23, %v3952_v51 }
 0x144   : > { %v964_v52 = vadd.f32 %v956_v19, %v910_v58  ;;  %v1064_v33 = vadd.f32 %v1056_v6, %v1024_v39  ;;  %v1190_v10 = vmul.f32 %v3895_v11, %v1077_v17  ;;  %v1130_v7 = vmul.f32 %v3951_v40, %v3051_v61 }
 0x145   : > { %v1379_v28 = vadd.f32 %v1371_v21, %v1351_v53  ;;  %v1244_v3 = vmul.f32 %v3979_v24, %v3982_v9  ;;  %v1170_v45 = vmul.f32 %v3954_v43, %v3231_v25  ;;  %v1284_v51 = vmul.f32 %v3983_v12, %v4006_v4  ;;  %v1232_v9 = vld [vmem:[#allocation2 + $0xd6] sm:$0xff] }
 0x146   : > { %v1004_v14 = vadd.f32 %v996_v46, %v964_v52  ;;  %v1118_v63 = vadd.f32 %v1110_v1, %v1064_v33  ;;  %v1210_v23 = vmul.f32 %v3859_v54, %v1078_v56  ;;  %v1264_v40 = vmul.f32 %v3981_v49, %v3029_v8 }
 0x147   : > { %1387 = vst [vmem:[%s2886_s24 + $0x30] sm:$0xff] %v1379_v28  ;;  %v1324_v24 = vmul.f32 %v3960_v5, %v3260_v50  ;;  %v1304_v25 = vmul.f32 %v4007_v47, %v3179_v0  ;;  %v1344_v54 = vmul.f32 %v4009_v16, %v1231_v22  ;;  %v1364_v30 = vmul.f32 %v1624_v37, %v1232_v9 }
 0x148   : > { %v1044_v2 = vadd.f32 %v1036_v13, %v1004_v14  ;;  %v1158_v32 = vadd.f32 %v1150_v15, %v1118_v63 }
 0x14a   : > { %v1098_v29 = vadd.f32 %v1090_v36, %v1044_v2  ;;  %v1198_v34 = vadd.f32 %v1190_v10, %v1158_v32 }
 0x14c   : > { %v1138_v62 = vadd.f32 %v1130_v7, %v1098_v29  ;;  %v1252_v26 = vadd.f32 %v1244_v3, %v1198_v34 }
 0x14e   : > { %v1178_v11 = vadd.f32 %v1170_v45, %v1138_v62  ;;  %v1292_v17 = vadd.f32 %v1284_v51, %v1252_v26 }
 0x150   : > { %v1218_v61 = vadd.f32 %v1210_v23, %v1178_v11  ;;  %v1332_v12 = vadd.f32 %v1324_v24, %v1292_v17 }
 0x152   : > { %v1272_v43 = vadd.f32 %v1264_v40, %v1218_v61  ;;  %v1372_v5 = vadd.f32 %v1364_v30, %v1332_v12 }
 0x154   : > { %v1312_v4 = vadd.f32 %v1304_v25, %v1272_v43 }
 0x156   : > { %v1352_v8 = vadd.f32 %v1344_v54, %v1312_v4 }
 0x158   : > { %v1380_v0 = vadd.f32 %v1372_v5, %v1352_v8 }
 0x15a   : > { %1388 = vst [vmem:[%s2886_s24 + $0x38] sm:$0xff] %v1380_v0 }
 0x15b   : > { %1696 = shalt.err (!%p1693_p5)
}
 0x15c   : > { %s1697_s6 = scalar_lea.hbm %s3378_s25, 1024  ;;  %s1701_s19 = scalar_lea.hbm %s3431_s3, 2048 }
 0x15d   : > { %p1698_p9 = scmp.ne.s32.totalorder %s3378_s25, %s1697_s6  ;;  %p1702_p3 = scmp.lt.u32.totalorder %s3378_s25, %s3431_s3 }
 0x15e   : > { %p1703_p7 = scmp.lt.u32.totalorder %s1701_s19, %s1697_s6  ;;  %p1705_p4 = scmp.lt.u32.totalorder %s1697_s6, %s3378_s25 }
 0x15f   : > { %p1699_p1 = pnand %p1698_p9, %p1898_p10 }
 0x160   : > { %p1704_p13 = por %p1703_p7, %p1702_p3 }
 0x161   : > { %p1700_p2 = pneg %p1699_p1 }
 0x162   : > { %p1706_p6 = por %p1705_p4, %p1704_p13 }
 0x164   : > { %p1707_p8 = pnand %p1706_p6, %p1700_p2 }
 0x166   : > { %1710 = shalt.err (!%p1707_p8)
}
 0x167   : > { %s1777_s24 = smov 128   ;;  %s1778_s11 = smov 8  }
 0x168   : > { %1541 = dma.vmem_to_hbm [thread:$0]  (%p1898_p10), %s3373_s10, 1024, %s3378_s25, %s1390_s8, %s1777_s24, %s1777_s24, %s1778_s11  }
 0x169 PF: > { %s1419_s9 = sand.u32 1, %s1749_s12   ;;  %p4018_p12 = scmp.ne.s32.totalorder %s3628_s23, 0 }
 0x16a   : > { %p4019_p11 = scmp.ge.s32.totalorder %s1769_s17, 2  ;;  %s1420_s18 = scalar_lea.sflag [#allocation5], %s1419_s9 }
 0x16c   : > { %p1552_p0 = pnand %p4019_p11, %p4018_p12 }
 0x16e   : > { %1744 = dma.done.wait (!%p1552_p0), %s1420_s18, 1024  }
 0x16f   : > { %1746 = vsyncadd (!%p1552_p0), %s1420_s18, 4294966272  ;;  %s20_s17 = sadd.s32 1, %s1769_s17   ;;  %s4020_s12 = smov %s1753_s13 }
 0x170   : > { %p17_p5 = scmp.ge.s32.totalorder %s20_s17, 4   ;;  %s4021_s13 = smov %s1757_s14 }
 0x171   : > { %s4022_s14 = smov %s1907_s5  ;;  %s4023_s15 = smov %s1765_s16 }
 0x172   : > { %s4024_s16 = smov %s4026_s28  ;;  %19 = sbr.rel (!%p17_p5) target bundleno = 7 (0x7), region = 87 }
 0x179   :  { %1425 = vsyncpa [#allocation4], 1 }
 0x17a   :  { %1427 = vsyncpa [#allocation4 + $0x1], 1 }
 0x17b   :  { %1428 = vsyncpa [#allocation7], 1 }
 0x17c   :  { %1429 = vsyncpa [#allocation5], 1 }
 0x17d   :  { %1431 = vsyncpa [#allocation5 + $0x1], 1 }

</bundles_post_ra>
